<compile_context>
chip_gen: v7x
topology: tpu7x:2x2x1
jax: 0.10.0
libtpu: 0.0.40
codegen_flags: <defaults>
</compile_context>

<pallas_src>
import functools

import jax
import jax.numpy as jnp
from jax.experimental import pallas as pl
from jax.experimental.pallas import tpu as pltpu

HIDDEN = 500
SBP_FEAT = 10
HID_PAD = 512            # 500 real rows + 2 folded (bias / sbp) rows -> 512


def _round_up(n, m):
    return (n + m - 1) // m * m


def _use_bf16_act():
    """bf16 PReLU only on chips with a bf16-capable VPU (v6e / v7x)."""
    try:
        kind = jax.devices()[0].device_kind.lower()
    except Exception:
        return False
    return ("v6" in kind) or ("v7" in kind)


# --------------------------------------------------------------------------
# Kernel
# --------------------------------------------------------------------------
def mlp_kernel(x_ref, sbp_ref, w1_ref, w2_ref, w3_ref, w4_ref, alpha_ref,
               out_ref, h_ref, *, act_in_bf16):
    f32 = jnp.float32
    bf16 = jnp.bfloat16

    alpha = alpha_ref[0, 0]                      # PReLU slope (SMEM scalar)
    alpha_b = alpha.astype(bf16)
    sbp = sbp_ref[...]                           # (TB, 1) f32
    one_col = jnp.ones_like(sbp).astype(bf16)    # drives the folded bias row
    sbp_col = sbp.astype(bf16)                   # drives the folded ws_eff row

    def act_store(v):
        """PReLU(v) -> bf16 activation scratch, then plant the 1.0 / sbp
        columns consumed by the next layer's folded bias / rank-1 sbp rows
        (two single-lane masked stores, ~TB/16 vregs each)."""
        if act_in_bf16:
            vb = v.astype(bf16)
            h = jnp.where(vb >= 0, vb, alpha_b * vb)
        else:
            h = jnp.where(v >= 0, v, alpha * v).astype(bf16)
        h_ref[...] = h                           # cols 500..511 of h are 0
        h_ref[:, HIDDEN:HIDDEN + 1] = one_col
        h_ref[:, HIDDEN + 1:HIDDEN + 2] = sbp_col

    # layer 1 — x already carries the 1.0 / sbp columns (planted in wrapper),
    # so the epilogue is just the activation.
    act_store(jnp.dot(x_ref[...], w1_ref[...], preferred_element_type=f32))
    # TODO(synk): dropout1 (p=0.1) / dropout2,3 (p=0.2) omitted — eval/inference
    # semantics (identity).
    act_store(jnp.dot(h_ref[...], w2_ref[...], preferred_element_type=f32))
    act_store(jnp.dot(h_ref[...], w3_ref[...], preferred_element_type=f32))
    # layer 4 (lane-dense padded output; sliced to num_classes outside)
    out_ref[...] = jnp.dot(h_ref[...], w4_ref[...], preferred_element_type=f32)


# --------------------------------------------------------------------------
# Parameters (torch-shaped, stored as (in, out))
# --------------------------------------------------------------------------
def init_params(key, input_size, num_classes):
    F = input_size * 2
    ks = jax.random.split(key, 6)

    def w(k, shape, fan_in):
        return jax.random.normal(k, shape, jnp.float32) / jnp.sqrt(fan_in)

    return {
        "w_sbp": w(ks[0], (1, SBP_FEAT), 1.0),                       # fc_sbp
        "b_sbp": jax.random.normal(ks[1], (1, SBP_FEAT), jnp.float32) * 0.01,
        "w1": w(ks[2], (F + SBP_FEAT, HIDDEN), F + SBP_FEAT),        # fc1
        "b1": jnp.zeros((1, HIDDEN), jnp.float32),
        "w2": w(ks[3], (HIDDEN + SBP_FEAT, HIDDEN), HIDDEN + SBP_FEAT),
        "b2": jnp.zeros((1, HIDDEN), jnp.float32),
        "w3": w(ks[4], (HIDDEN + SBP_FEAT, HIDDEN), HIDDEN + SBP_FEAT),
        "b3": jnp.zeros((1, HIDDEN), jnp.float32),
        "w4": w(ks[5], (HIDDEN + SBP_FEAT, num_classes), HIDDEN + SBP_FEAT),
        "b4": jnp.zeros((1, num_classes), jnp.float32),
        "alpha": jnp.full((1, 1), 0.25, jnp.float32),                # PReLU
    }


def _fold_and_pad(params, F, f_pad, nc_pad):
    """Fold fc_sbp + bias of every layer into the zero-padded K rows.

    cat(h, sbp @ Wsbp + bsbp) @ W + b
      = h @ W[:k]  +  1.0 * (b + bsbp @ W[k:])  +  sbp * (Wsbp @ W[k:])
    so row k of the padded weight holds b_eff and row k+1 holds ws_eff; the
    LHS carries matching 1.0 / sbp columns.  Everything comes free through the
    already-streamed padded K rows of the MXU matmul.
    """
    w_sbp, b_sbp = params["w_sbp"], params["b_sbp"]

    def fold(w_full, b, k_h, k_pad, n_pad):
        wh = w_full[:k_h]                      # (k_h, N)  — the h / x part
        ws = w_full[k_h:]                      # (10, N)   — the sbp_feat part
        ws_eff = w_sbp @ ws                    # (1, N)  rank-1 sbp coefficient
        b_eff = b + b_sbp @ ws                 # (1, N)  fc_sbp bias folded in
        n = wh.shape[1]
        wp = jnp.zeros((k_pad, n_pad), jnp.float32)
        wp = wp.at[:k_h, :n].set(wh)
        wp = wp.at[k_h, :n].set(b_eff[0])      # hit by the planted 1.0 column
        wp = wp.at[k_h + 1, :n].set(ws_eff[0])  # hit by the planted sbp column
        return wp.astype(jnp.bfloat16)

    return (
        fold(params["w1"], params["b1"], F, f_pad, HID_PAD),
        fold(params["w2"], params["b2"], HIDDEN, HID_PAD, HID_PAD),
        fold(params["w3"], params["b3"], HIDDEN, HID_PAD, HID_PAD),
        fold(params["w4"], params["b4"], HIDDEN, HID_PAD, nc_pad),
    )


def _pad_inputs(x, sbp, F, F_PAD, B_pad):
    """Flatten, append the 1.0 / sbp columns, cast to bf16 and zero-pad — all
    in one fused pass (single HBM write of x_p)."""
    B = x.shape[0]
    x_flat = x.reshape(B, F).astype(jnp.float32)
    ones = jnp.ones((B, 1), jnp.float32)
    sbp_c = sbp.reshape(B, 1).astype(jnp.float32)
    aug = jnp.concatenate([x_flat, ones, sbp_c], axis=1).astype(jnp.bfloat16)
    x_p = jnp.zeros((B_pad, F_PAD), jnp.bfloat16).at[:B, :F + 2].set(aug)
    sbp_p = jnp.zeros((B_pad, 1), jnp.float32).at[:B, 0].set(
        sbp.astype(jnp.float32))
    return x_p, sbp_p


def _pick_tb(B, batch_tile):
    """Batch tile: multiple of 16 (bf16 sublane tile), >= 2 grid steps when the
    batch allows (v7x megacore), capped by `batch_tile`."""
    B16 = _round_up(max(B, 1), 16)
    half = _round_up((B16 + 1) // 2, 16)            # ~half batch -> >= 2 tiles
    tb = min(_round_up(max(batch_tile, 16), 16), max(half, 16))
    if tb >= 128:
        tb = (tb // 128) * 128                      # MXU-pass-height friendly
    return max(tb, 16)


def _vmem_limit_bytes(TB, F_PAD, NC_PAD):
    """Compute a vmem limit from the real footprint (default 2x buffering)."""
    w_bytes = 2 * (F_PAD * HID_PAD + 2 * HID_PAD * HID_PAD + HID_PAD * NC_PAD)
    blk_bytes = TB * F_PAD * 2 + TB * 1 * 4 + TB * NC_PAD * 4
    scratch_bytes = TB * HID_PAD * 2
    total = 2 * (w_bytes + blk_bytes) + scratch_bytes
    return int(min(max(total + (4 << 20), 16 << 20), 100 << 20))


# --------------------------------------------------------------------------
# Wrapper
# --------------------------------------------------------------------------
def mlp_forward(params, x, sbp, num_classes, *, batch_tile=1024,
                act_in_bf16=None):
    """x: (B, input_size, 2) f32, sbp: (B,) f32 -> (B, num_classes) f32."""
    if act_in_bf16 is None:
        act_in_bf16 = _use_bf16_act()

    B = x.shape[0]
    F = x.shape[1] * x.shape[2]
    F_PAD = _round_up(F + 2, 128)          # +2 for the planted 1.0/sbp columns
    NC_PAD = _round_up(num_classes, 128)

    TB = _pick_tb(B, batch_tile)
    B_pad = _round_up(B, TB)
    n_tiles = B_pad // TB

    x_p, sbp_p = _pad_inputs(x, sbp, F, F_PAD, B_pad)
    weights = _fold_and_pad(params, F, F_PAD, NC_PAD)
    alpha = params["alpha"].reshape(1, 1).astype(jnp.float32)

    # Weights: full-array blocks with constant index_maps so they stay
    # VMEM-resident across batch-grid steps.
    in_specs = (
        [pl.BlockSpec((TB, F_PAD), lambda i: (i, 0)),          # x tile
         pl.BlockSpec((TB, 1), lambda i: (i, 0))]              # sbp tile
        + [pl.BlockSpec(w.shape, lambda i: (0, 0)) for w in weights]
        + [pl.BlockSpec(memory_space=pltpu.MemorySpace.SMEM)]  # alpha scalar
    )
    out_spec = pl.BlockSpec((TB, NC_PAD), lambda i: (i, 0))

    out_padded = pl.pallas_call(
        functools.partial(mlp_kernel, act_in_bf16=act_in_bf16),
        out_shape=jax.ShapeDtypeStruct((B_pad, NC_PAD), jnp.float32),
        grid=(n_tiles,),
        in_specs=in_specs,
        out_specs=out_spec,
        scratch_shapes=[pltpu.VMEM((TB, HID_PAD), jnp.bfloat16)],
        compiler_params=pltpu.CompilerParams(
            dimension_semantics=("parallel",),
            vmem_limit_bytes=_vmem_limit_bytes(TB, F_PAD, NC_PAD),
        ),
    )(x_p, sbp_p, *weights, alpha)

    return out_padded[:B, :num_classes]


# --------------------------------------------------------------------------
# References
# --------------------------------------------------------------------------
def mlp_reference(params, x, sbp):
    """Pure f32 JAX reference mirroring the PyTorch forward (eval mode)."""
    B = x.shape[0]
    xf = x.reshape(B, -1)
    sbp_feat = sbp.reshape(B, 1) @ params["w_sbp"] + params["b_sbp"]
    a = params["alpha"][0, 0]

    def prelu(v):
        return jnp.where(v >= 0, v, a * v)

    h = jnp.concatenate([xf, sbp_feat], axis=1)
    h = prelu(h @ params["w1"] + params["b1"])
    h = jnp.concatenate([h, sbp_feat], axis=1)
    h = prelu(h @ params["w2"] + params["b2"])
    h = jnp.concatenate([h, sbp_feat], axis=1)
    h = prelu(h @ params["w3"] + params["b3"])
    h = jnp.concatenate([h, sbp_feat], axis=1)
    return h @ params["w4"] + params["b4"]


def mlp_reference_folded(params, x, sbp, num_classes, act_in_bf16):
    """Mirrors the kernel numerics exactly: same folded/padded bf16 weights,
    same planted 1.0/sbp columns, same activation dtype path."""
    f32, bf16 = jnp.float32, jnp.bfloat16
    B = x.shape[0]
    F = x.shape[1] * x.shape[2]
    F_PAD = _round_up(F + 2, 128)
    NC_PAD = _round_up(num_classes, 128)

    x_p, sbp_p = _pad_inputs(x, sbp, F, F_PAD, B)
    w1, w2, w3, w4 = _fold_and_pad(params, F, F_PAD, NC_PAD)
    a = params["alpha"][0, 0]
    cols2 = jnp.concatenate(
        [jnp.ones_like(sbp_p), sbp_p], axis=1).astype(bf16)

    def act(v):
        if act_in_bf16:
            vb = v.astype(bf16)
            h = jnp.where(vb >= 0, vb, a.astype(bf16) * vb)
        else:
            h = jnp.where(v >= 0, v, a * v).astype(bf16)
        return jnp.concatenate(
            [h[:, :HIDDEN], cols2, h[:, HIDDEN + 2:]], axis=1)

    h = act(jnp.dot(x_p, w1, preferred_element_type=f32))
    h = act(jnp.dot(h, w2, preferred_element_type=f32))
    h = act(jnp.dot(h, w3, preferred_element_type=f32))
    out = jnp.dot(h, w4, preferred_element_type=f32)
    return out[:, :num_classes]


# --------------------------------------------------------------------------
if __name__ == "__main__":
    input_size = 16
    num_classes = 4
    batch = 8

    key = jax.random.PRNGKey(0)
    kp, kx, ks = jax.random.split(key, 3)

    params = init_params(kp, input_size, num_classes)
    x = jax.random.normal(kx, (batch, input_size, 2), jnp.float32)
    sbp = jax.random.normal(ks, (batch,), jnp.float32) * 20.0 + 120.0

    act_flag = _use_bf16_act()
    out = jax.block_until_ready(
        mlp_forward(params, x, sbp, num_classes, act_in_bf16=act_flag))
    assert out.shape == (batch, num_classes)

    # Tight check against a pure-JAX reference with identical folded-bf16
    # numerics (only matmul accumulation order may differ).
    ref_q = mlp_reference_folded(params, x, sbp, num_classes, act_flag)
    err = float(jnp.max(jnp.abs(out - ref_q)))
    scale = float(jnp.max(jnp.abs(ref_q))) + 1e-6
    assert err <= 1e-2 * scale + 1e-3, (
        f"folded-bf16 ref mismatch: max abs diff {err} (scale {scale})")

    # Loose sanity check against the exact f32 PyTorch-semantics reference
    # (differences are only bf16 operand rounding).
    ref = mlp_reference(params, x, sbp)
    rel_err = float(jnp.max(jnp.abs(out - ref)) / (jnp.max(jnp.abs(ref)) + 1e-6))
    assert rel_err < 0.05, f"f32-ref relative error too large: {rel_err}"

    print("KERNEL_OK")
</pallas_src>

<mosaic_0001>
module attributes {stable_mosaic.version = 11 : i64} {
  func.func @mlp_kernel(%arg0: i32, %arg1: memref<16x128xbf16, #tpu.memory_space<vmem>>, %arg2: memref<16x1xf32, #tpu.memory_space<vmem>>, %arg3: memref<128x512xbf16, #tpu.memory_space<vmem>>, %arg4: memref<512x512xbf16, #tpu.memory_space<vmem>>, %arg5: memref<512x512xbf16, #tpu.memory_space<vmem>>, %arg6: memref<512x128xbf16, #tpu.memory_space<vmem>>, %arg7: memref<1x1xf32, #tpu.memory_space<smem>>, %arg8: memref<16x128xf32, #tpu.memory_space<vmem>>, %arg9: memref<16x512xbf16, #tpu.memory_space<vmem>>) attributes {dimension_semantics = [#tpu.dimension_semantics<parallel>], iteration_bounds = array<i64: 1>, scalar_prefetch = 0 : i64, scratch_operands = 1 : i64, tpu.core_type = #tpu.core_type<tc>, window_params = [{transform_indices = @transform_0, window_bounds = array<i64: 16, 128>}, {transform_indices = @transform_1, window_bounds = array<i64: 16, 1>}, {pipeline_mode = #tpu.pipeline_mode<synchronous>, transform_indices = @transform_2, window_bounds = array<i64: 128, 512>}, {pipeline_mode = #tpu.pipeline_mode<synchronous>, transform_indices = @transform_3, window_bounds = array<i64: 512, 512>}, {pipeline_mode = #tpu.pipeline_mode<synchronous>, transform_indices = @transform_4, window_bounds = array<i64: 512, 512>}, {pipeline_mode = #tpu.pipeline_mode<synchronous>, transform_indices = @transform_5, window_bounds = array<i64: 512, 128>}, {transform_indices = @transform_6, window_bounds = array<i64: 1, 1>}, {transform_indices = @transform_7, window_bounds = array<i64: 16, 128>}]} {
    %c0 = arith.constant 0 : index
    %c0_0 = arith.constant 0 : index
    %0 = memref.load %arg7[%c0, %c0_0] : memref<1x1xf32, #tpu.memory_space<smem>>
    %c0_1 = arith.constant 0 : index
    %c0_2 = arith.constant 0 : index
    %1 = vector.load %arg2[%c0_1, %c0_2] : memref<16x1xf32, #tpu.memory_space<vmem>>, vector<16x1xf32>
    %cst = arith.constant 1.000000e+00 : f32
    %2 = vector.broadcast %cst : f32 to vector<16x1xf32>
    %3 = arith.truncf %2 : vector<16x1xf32> to vector<16x1xbf16>
    %4 = arith.truncf %1 : vector<16x1xf32> to vector<16x1xbf16>
    %c0_3 = arith.constant 0 : index
    %c0_4 = arith.constant 0 : index
    %5 = vector.load %arg1[%c0_3, %c0_4] : memref<16x128xbf16, #tpu.memory_space<vmem>>, vector<16x128xbf16>
    %c0_5 = arith.constant 0 : index
    %c0_6 = arith.constant 0 : index
    %6 = vector.load %arg3[%c0_5, %c0_6] : memref<128x512xbf16, #tpu.memory_space<vmem>>, vector<128x512xbf16>
    %cst_7 = arith.constant dense<0.000000e+00> : vector<16x512xf32>
    %7 = tpu.matmul %5, %6, %cst_7 {dimension_numbers = #tpu.dot_dimension_numbers<[1], [0], [0], [1], [0, 0, 1, 1], [], []>} : vector<16x128xbf16>, vector<128x512xbf16>, vector<16x512xf32> -> vector<16x512xf32>
    %cst_8 = arith.constant 0.000000e+00 : f32
    %8 = vector.broadcast %cst_8 : f32 to vector<16x512xf32>
    %9 = arith.cmpf oge, %7, %8 : vector<16x512xf32>
    %10 = vector.broadcast %0 : f32 to vector<16x512xf32>
    %11 = arith.mulf %10, %7 : vector<16x512xf32>
    %12 = arith.select %9, %7, %11 : vector<16x512xi1>, vector<16x512xf32>
    %13 = arith.truncf %12 : vector<16x512xf32> to vector<16x512xbf16>
    %c0_9 = arith.constant 0 : index
    %c0_10 = arith.constant 0 : index
    %14 = vector.load %arg9[%c0_9, %c0_10] : memref<16x512xbf16, #tpu.memory_space<vmem>>, vector<16x512xbf16>
    tpu.vector_store %arg9[%c0_9, %c0_10], %13 {strides = array<i32>} : memref<16x512xbf16, #tpu.memory_space<vmem>>, vector<16x512xbf16>,
    %c0_11 = arith.constant 0 : index
    %c500 = arith.constant 500 : index
    %15 = vector.load %arg9[%c0_11, %c500] : memref<16x512xbf16, #tpu.memory_space<vmem>>, vector<16x1xbf16>
    tpu.vector_store %arg9[%c0_11, %c500], %3 {strides = array<i32>} : memref<16x512xbf16, #tpu.memory_space<vmem>>, vector<16x1xbf16>,
    %c0_12 = arith.constant 0 : index
    %c501 = arith.constant 501 : index
    %16 = vector.load %arg9[%c0_12, %c501] : memref<16x512xbf16, #tpu.memory_space<vmem>>, vector<16x1xbf16>
    tpu.vector_store %arg9[%c0_12, %c501], %4 {strides = array<i32>} : memref<16x512xbf16, #tpu.memory_space<vmem>>, vector<16x1xbf16>,
    %c0_13 = arith.constant 0 : index
    %c0_14 = arith.constant 0 : index
    %17 = vector.load %arg9[%c0_13, %c0_14] : memref<16x512xbf16, #tpu.memory_space<vmem>>, vector<16x512xbf16>
    %c0_15 = arith.constant 0 : index
    %c0_16 = arith.constant 0 : index
    %18 = vector.load %arg4[%c0_15, %c0_16] : memref<512x512xbf16, #tpu.memory_space<vmem>>, vector<512x512xbf16>
    %cst_17 = arith.constant dense<0.000000e+00> : vector<16x512xf32>
    %19 = tpu.matmul %17, %18, %cst_17 {dimension_numbers = #tpu.dot_dimension_numbers<[1], [0], [0], [1], [0, 0, 1, 1], [], []>} : vector<16x512xbf16>, vector<512x512xbf16>, vector<16x512xf32> -> vector<16x512xf32>
    %cst_18 = arith.constant 0.000000e+00 : f32
    %20 = vector.broadcast %cst_18 : f32 to vector<16x512xf32>
    %21 = arith.cmpf oge, %19, %20 : vector<16x512xf32>
    %22 = vector.broadcast %0 : f32 to vector<16x512xf32>
    %23 = arith.mulf %22, %19 : vector<16x512xf32>
    %24 = arith.select %21, %19, %23 : vector<16x512xi1>, vector<16x512xf32>
    %25 = arith.truncf %24 : vector<16x512xf32> to vector<16x512xbf16>
    %c0_19 = arith.constant 0 : index
    %c0_20 = arith.constant 0 : index
    %26 = vector.load %arg9[%c0_19, %c0_20] : memref<16x512xbf16, #tpu.memory_space<vmem>>, vector<16x512xbf16>
    tpu.vector_store %arg9[%c0_19, %c0_20], %25 {strides = array<i32>} : memref<16x512xbf16, #tpu.memory_space<vmem>>, vector<16x512xbf16>,
    %c0_21 = arith.constant 0 : index
    %c500_22 = arith.constant 500 : index
    %27 = vector.load %arg9[%c0_21, %c500_22] : memref<16x512xbf16, #tpu.memory_space<vmem>>, vector<16x1xbf16>
    tpu.vector_store %arg9[%c0_21, %c500_22], %3 {strides = array<i32>} : memref<16x512xbf16, #tpu.memory_space<vmem>>, vector<16x1xbf16>,
    %c0_23 = arith.constant 0 : index
    %c501_24 = arith.constant 501 : index
    %28 = vector.load %arg9[%c0_23, %c501_24] : memref<16x512xbf16, #tpu.memory_space<vmem>>, vector<16x1xbf16>
    tpu.vector_store %arg9[%c0_23, %c501_24], %4 {strides = array<i32>} : memref<16x512xbf16, #tpu.memory_space<vmem>>, vector<16x1xbf16>,
    %c0_25 = arith.constant 0 : index
    %c0_26 = arith.constant 0 : index
    %29 = vector.load %arg9[%c0_25, %c0_26] : memref<16x512xbf16, #tpu.memory_space<vmem>>, vector<16x512xbf16>
    %c0_27 = arith.constant 0 : index
    %c0_28 = arith.constant 0 : index
    %30 = vector.load %arg5[%c0_27, %c0_28] : memref<512x512xbf16, #tpu.memory_space<vmem>>, vector<512x512xbf16>
    %cst_29 = arith.constant dense<0.000000e+00> : vector<16x512xf32>
    %31 = tpu.matmul %29, %30, %cst_29 {dimension_numbers = #tpu.dot_dimension_numbers<[1], [0], [0], [1], [0, 0, 1, 1], [], []>} : vector<16x512xbf16>, vector<512x512xbf16>, vector<16x512xf32> -> vector<16x512xf32>
    %cst_30 = arith.constant 0.000000e+00 : f32
    %32 = vector.broadcast %cst_30 : f32 to vector<16x512xf32>
    %33 = arith.cmpf oge, %31, %32 : vector<16x512xf32>
    %34 = vector.broadcast %0 : f32 to vector<16x512xf32>
    %35 = arith.mulf %34, %31 : vector<16x512xf32>
    %36 = arith.select %33, %31, %35 : vector<16x512xi1>, vector<16x512xf32>
    %37 = arith.truncf %36 : vector<16x512xf32> to vector<16x512xbf16>
    %c0_31 = arith.constant 0 : index
    %c0_32 = arith.constant 0 : index
    %38 = vector.load %arg9[%c0_31, %c0_32] : memref<16x512xbf16, #tpu.memory_space<vmem>>, vector<16x512xbf16>
    tpu.vector_store %arg9[%c0_31, %c0_32], %37 {strides = array<i32>} : memref<16x512xbf16, #tpu.memory_space<vmem>>, vector<16x512xbf16>,
    %c0_33 = arith.constant 0 : index
    %c500_34 = arith.constant 500 : index
    %39 = vector.load %arg9[%c0_33, %c500_34] : memref<16x512xbf16, #tpu.memory_space<vmem>>, vector<16x1xbf16>
    tpu.vector_store %arg9[%c0_33, %c500_34], %3 {strides = array<i32>} : memref<16x512xbf16, #tpu.memory_space<vmem>>, vector<16x1xbf16>,
    %c0_35 = arith.constant 0 : index
    %c501_36 = arith.constant 501 : index
    %40 = vector.load %arg9[%c0_35, %c501_36] : memref<16x512xbf16, #tpu.memory_space<vmem>>, vector<16x1xbf16>
    tpu.vector_store %arg9[%c0_35, %c501_36], %4 {strides = array<i32>} : memref<16x512xbf16, #tpu.memory_space<vmem>>, vector<16x1xbf16>,
    %c0_37 = arith.constant 0 : index
    %c0_38 = arith.constant 0 : index
    %41 = vector.load %arg9[%c0_37, %c0_38] : memref<16x512xbf16, #tpu.memory_space<vmem>>, vector<16x512xbf16>
    %c0_39 = arith.constant 0 : index
    %c0_40 = arith.constant 0 : index
    %42 = vector.load %arg6[%c0_39, %c0_40] : memref<512x128xbf16, #tpu.memory_space<vmem>>, vector<512x128xbf16>
    %cst_41 = arith.constant dense<0.000000e+00> : vector<16x128xf32>
    %43 = tpu.matmul %41, %42, %cst_41 {dimension_numbers = #tpu.dot_dimension_numbers<[1], [0], [0], [1], [0, 0, 1, 1], [], []>} : vector<16x512xbf16>, vector<512x128xbf16>, vector<16x128xf32> -> vector<16x128xf32>
    %c0_42 = arith.constant 0 : index
    %c0_43 = arith.constant 0 : index
    %44 = vector.load %arg8[%c0_42, %c0_43] : memref<16x128xf32, #tpu.memory_space<vmem>>, vector<16x128xf32>
    tpu.vector_store %arg8[%c0_42, %c0_43], %43 {strides = array<i32>} : memref<16x128xf32, #tpu.memory_space<vmem>>, vector<16x128xf32>,
    return
  }
  func.func @transform_0(%arg0: i32) -> (i32, i32) {
    %c0_i32 = arith.constant 0 : i32
    %c0_i32_0 = arith.constant 0 : i32
    return %arg0, %c0_i32 : i32, i32
  }
  func.func @transform_1(%arg0: i32) -> (i32, i32) {
    %c0_i32 = arith.constant 0 : i32
    %c0_i32_0 = arith.constant 0 : i32
    return %arg0, %c0_i32 : i32, i32
  }
  func.func @transform_2(%arg0: i32) -> (i32, i32) {
    %c0_i32 = arith.constant 0 : i32
    %c0_i32_0 = arith.constant 0 : i32
    %c0_i32_1 = arith.constant 0 : i32
    return %c0_i32, %c0_i32_0 : i32, i32
  }
  func.func @transform_3(%arg0: i32) -> (i32, i32) {
    %c0_i32 = arith.constant 0 : i32
    %c0_i32_0 = arith.constant 0 : i32
    %c0_i32_1 = arith.constant 0 : i32
    return %c0_i32, %c0_i32_0 : i32, i32
  }
  func.func @transform_4(%arg0: i32) -> (i32, i32) {
    %c0_i32 = arith.constant 0 : i32
    %c0_i32_0 = arith.constant 0 : i32
    %c0_i32_1 = arith.constant 0 : i32
    return %c0_i32, %c0_i32_0 : i32, i32
  }
  func.func @transform_5(%arg0: i32) -> (i32, i32) {
    %c0_i32 = arith.constant 0 : i32
    %c0_i32_0 = arith.constant 0 : i32
    %c0_i32_1 = arith.constant 0 : i32
    return %c0_i32, %c0_i32_0 : i32, i32
  }
  func.func @transform_6(%arg0: i32) -> (i32, i32) {
    %c0_i32 = arith.constant 0 : i32
    %c0_i32_0 = arith.constant 0 : i32
    %c0_i32_1 = arith.constant 0 : i32
    return %c0_i32, %c0_i32_0 : i32, i32
  }
  func.func @transform_7(%arg0: i32) -> (i32, i32) {
    %c0_i32 = arith.constant 0 : i32
    %c0_i32_0 = arith.constant 0 : i32
    return %arg0, %c0_i32 : i32, i32
  }
}

</mosaic_0001>

<bundles_post_ra>
// kernel: tpu_custom_call.1
= control target key start
LH: loop header
LB: loop body
LE: loop exit
PB: predicated region body
PF: predicated region fallthrough
CT: control target
= control target key end

     0   :  { %13 = vsyncpa [#allocation5], 0  ;;  %s3916_s0 = inlined_call_operand.vmem [shape: bf16[16,128], index: 0, kind: input, shape index: {}]   ;;  %s3917_s1 = inlined_call_operand.vmem [shape: f32[16,1], index: 1, kind: input, shape index: {}]   ;;  %s3918_s2 = inlined_call_operand.hbm [shape: bf16[128,512], index: 2, kind: input, shape index: {}]   ;;  %s3919_s3 = inlined_call_operand.hbm [shape: bf16[512,512], index: 3, kind: input, shape index: {}]   ;;  %s3920_s4 = inlined_call_operand.hbm [shape: bf16[512,512], index: 4, kind: input, shape index: {}]   ;;  %s3921_s5 = inlined_call_operand.hbm [shape: bf16[512,128], index: 5, kind: input, shape index: {}]   ;;  %s3922_s6 = inlined_call_operand.<no memory space> [shape: f32[1,1], index: 6, kind: input, shape index: {}]   ;;  %s3923_s7 = inlined_call_operand.hbm [shape: f32[16,128], index: 7, kind: output, shape index: {}]  }
   0x1   :  { %14 = vsyncpa [#allocation8], 0 }
   0x2   :  { %15 = vsyncpa [#allocation11], 0 }
   0x3   :  { %16 = vsyncpa [#allocation6], 0  ;;  %s3713_s24 = smov [#allocation7]   ;;  %s3714_s26 = smov [#allocation4]  }
   0x4   :  { %s38_s25 = sshll.u32 %s3713_s24, 4  ;;  %s26_s27 = sshll.u32 %s3714_s26, 4  ;;  %s39_s25 = int_to_ptr.vmem [resolvable:$true] %s38_s25  ;;  %s3767_s27 = int_to_ptr.vmem [resolvable:$true] %s26_s27 }
   0x5   :  { %s3595_s30 = scalar_lea.hbm %s3919_s3, 16384 }
   0x6   :  { %p3596_p0 = scmp.ne.s32.totalorder %s3919_s3, %s3595_s30  ;;  %p3599_p1 = scmp.lt.u32.totalorder %s3595_s30, %s3919_s3 }
   0x8   :  { %p3601_p2 = pnand %p3599_p1, %p3596_p0 }
   0xa   :  { %3604 = shalt.err (!%p3601_p2)
}
   0xb   :  { %s3605_s12 = scalar_lea.vmem %s39_s25, 16384  ;;  %p3610_p4 = scmp.lt.s32.totalorder %s39_s25, %s39_s25 }
   0xc   :  { %p3606_p3 = scmp.ne.s32.totalorder %s39_s25, %s3605_s12  ;;  %p3611_p5 = scmp.lt.s32.totalorder %s3605_s12, %s3605_s12 }
   0xe   :  { %p3612_p6 = por %p3611_p5, %p3610_p4 }
  0x10   :  { %p3613_p7 = pnand %p3612_p6, %p3606_p3 }
  0x12   :  { %3616 = shalt.err (!%p3613_p7)
}
  0x13   :  { %s3715_s13 = smov 256   ;;  %s3716_s14 = smov 16  }
  0x14   :  { %44 = dma.hbm_to_vmem [thread:$0]  %s3919_s3, 16384, %s39_s25, [#allocation8], %s3715_s13, %s3715_s13, %s3716_s14  }
  0x15   :  { %s3617_s19 = scalar_lea.hbm %s3918_s2, 4096 }
  0x16   :  { %p3618_p8 = scmp.ne.s32.totalorder %s3918_s2, %s3617_s19  ;;  %p3621_p9 = scmp.lt.u32.totalorder %s3617_s19, %s3918_s2 }
  0x18   :  { %p3623_p10 = pnand %p3621_p9, %p3618_p8 }
  0x1a   :  { %3626 = shalt.err (!%p3623_p10)
}
  0x1b   :  { %s3627_s24 = scalar_lea.vmem %s3767_s27, 4096  ;;  %p3632_p12 = scmp.lt.s32.totalorder %s3767_s27, %s3767_s27 }
  0x1c   :  { %p3628_p11 = scmp.ne.s32.totalorder %s3767_s27, %s3627_s24  ;;  %p3633_p13 = scmp.lt.s32.totalorder %s3627_s24, %s3627_s24 }
  0x1e   :  { %p3634_p0 = por %p3633_p13, %p3632_p12 }
  0x20   :  { %p3635_p1 = pnand %p3634_p0, %p3628_p11 }
  0x22   :  { %3638 = shalt.err (!%p3635_p1)
}
  0x23   :  { %32 = dma.hbm_to_vmem [thread:$0]  %s3918_s2, 4096, %s3767_s27, [#allocation5], %s3715_s13, %s3715_s13, %s3716_s14  }
  0x24   :  { %s3717_s26 = smov [#allocation9]   ;;  %s3718_s29 = smov [#allocation10]  }
  0x25   :  { %s50_s28 = sshll.u32 %s3717_s26, 4  ;;  %s62_s30 = sshll.u32 %s3718_s29, 4  ;;  %s51_s28 = int_to_ptr.vmem [resolvable:$true] %s50_s28  ;;  %s3804_s30 = int_to_ptr.vmem [resolvable:$true] %s62_s30 }
  0x26   :  { %s3639_s10 = scalar_lea.hbm %s3920_s4, 16384 }
  0x27   :  { %p3640_p2 = scmp.ne.s32.totalorder %s3920_s4, %s3639_s10  ;;  %p3643_p3 = scmp.lt.u32.totalorder %s3639_s10, %s3920_s4 }
  0x29   :  { %p3645_p4 = pnand %p3643_p3, %p3640_p2 }
  0x2b   :  { %3648 = shalt.err (!%p3645_p4)
}
  0x2c   :  { %s3649_s2 = scalar_lea.vmem %s51_s28, 16384  ;;  %p3654_p6 = scmp.lt.s32.totalorder %s51_s28, %s51_s28 }
  0x2d   :  { %p3650_p5 = scmp.ne.s32.totalorder %s51_s28, %s3649_s2  ;;  %p3655_p7 = scmp.lt.s32.totalorder %s3649_s2, %s3649_s2 }
  0x2f   :  { %p3656_p8 = por %p3655_p7, %p3654_p6 }
  0x31   :  { %p3657_p9 = pnand %p3656_p8, %p3650_p5 }
  0x33   :  { %3660 = shalt.err (!%p3657_p9)
}
  0x34   :  { %56 = dma.hbm_to_vmem [thread:$0]  %s3920_s4, 16384, %s51_s28, [#allocation8], %s3715_s13, %s3715_s13, %s3716_s14  }
  0x35   :  { %s3661_s20 = scalar_lea.hbm %s3921_s5, 4096 }
  0x36   :  { %p3662_p10 = scmp.ne.s32.totalorder %s3921_s5, %s3661_s20  ;;  %p3665_p11 = scmp.lt.u32.totalorder %s3661_s20, %s3921_s5 }
  0x38   :  { %p3667_p12 = pnand %p3665_p11, %p3662_p10 }
  0x3a   :  { %3670 = shalt.err (!%p3667_p12)
}
  0x3b   :  { %s3671_s3 = scalar_lea.vmem %s3804_s30, 4096  ;;  %p3676_p0 = scmp.lt.s32.totalorder %s3804_s30, %s3804_s30 }
  0x3c   :  { %p3672_p13 = scmp.ne.s32.totalorder %s3804_s30, %s3671_s3  ;;  %p3677_p1 = scmp.lt.s32.totalorder %s3671_s3, %s3671_s3 }
  0x3e   :  { %p3678_p2 = por %p3677_p1, %p3676_p0 }
  0x40   :  { %p3679_p3 = pnand %p3678_p2, %p3672_p13 }
  0x42   :  { %3682 = shalt.err (!%p3679_p3)
}
  0x43   :  { %s3719_s4 = smov 64   ;;  %s3720_s13 = smov 4  }
  0x44   :  { %68 = dma.hbm_to_vmem [thread:$0]  %s3921_s5, 4096, %s3804_s30, [#allocation11], %s3719_s4, %s3719_s4, %s3720_s13  }
  0x45   :  { %3705 = dma.done.wait [#allocation5], 4096  }
  0x46   :  { %3706 = vsyncadd [#allocation5], 4294963200 }
  0x47   :  { %3707 = dma.done.wait [#allocation8], 32768  }
  0x48   :  { %3708 = vsyncadd [#allocation8], 4294934528 }
  0x49   :  { %3709 = dma.done.wait [#allocation11], 4096  }
  0x4a   :  { %3710 = vsyncadd [#allocation11], 4294963200  ;;  %v3721_v0 = vmov 0   ;;  %v3130_v1 = vld [vmem:[#allocation4 + $0x4] ss:$16 sps:$4 sm:$0xff]   ;;  %v87_v26 = vld [vmem:[%s3917_s1 + $0x8] sm:$0xff] }
  0x4b   :  { %321 = vmatprep.mubr.bf16.mxu0 %v3721_v0  ;;  %364 = vmatprep.mubr.bf16.mxu1 %v3721_v0  ;;  %v3132_v2 = vld [vmem:[#allocation4] ss:$16 sps:$4 sm:$0xff]   ;;  %v3133_v3 = vld [vmem:[#allocation4 + $0x24] ss:$16 sps:$4 sm:$0xff]   ;;  %v3155_v10 = vld [vmem:[#allocation4 + $0xc] ss:$16 sps:$4 sm:$0xff]  }
  0x4c   :  { %289 = vmatprep.subr.bf16.mxu0 %v3130_v1  ;;  %v3135_v4 = vld [vmem:[#allocation4 + $0x20] ss:$16 sps:$4 sm:$0xff]   ;;  %v3136_v5 = vld [vmem:[#allocation4 + $0x44] ss:$16 sps:$4 sm:$0xff]   ;;  %v3157_v11 = vld [vmem:[#allocation4 + $0x8] ss:$16 sps:$4 sm:$0xff]   ;;  %332 = vmatprep.subr.bf16.mxu1 %v3155_v10 }
  0x4d   :  { %290 = vmatpush1.bf16.msra.mxu0 %v3132_v2  ;;  %v3138_v6 = vld [vmem:[#allocation4 + $0x40] ss:$16 sps:$4 sm:$0xff]   ;;  %v3139_v7 = vld [vmem:[#allocation4 + $0x64] ss:$16 sps:$4 sm:$0xff]   ;;  %v3158_v12 = vld [vmem:[#allocation4 + $0x2c] ss:$16 sps:$4 sm:$0xff]   ;;  %333 = vmatpush1.bf16.msra.mxu1 %v3157_v11 }
  0x4e   :  { %291 = vmatprep.subr.bf16.mxu0 %v3133_v3  ;;  %v3141_v8 = vld [vmem:[#allocation4 + $0x60] ss:$16 sps:$4 sm:$0xff]   ;;  %v3142_v9 = vld [vmem:[#allocation4 + $0x84] ss:$16 sps:$4 sm:$0xff]   ;;  %v3160_v14 = vld [vmem:[#allocation4 + $0x28] ss:$16 sps:$4 sm:$0xff]   ;;  %334 = vmatprep.subr.bf16.mxu1 %v3158_v12 }
  0x4f   :  { %v3144_v13 = vld [vmem:[#allocation4 + $0x80] ss:$16 sps:$4 sm:$0xff]   ;;  %v3145_v15 = vld [vmem:[#allocation4 + $0xa4] ss:$16 sps:$4 sm:$0xff]   ;;  %v3161_v16 = vld [vmem:[#allocation4 + $0x4c] ss:$16 sps:$4 sm:$0xff]  }
  0x50   :  { %v3147_v17 = vld [vmem:[#allocation4 + $0xa0] ss:$16 sps:$4 sm:$0xff]   ;;  %v3163_v18 = vld [vmem:[#allocation4 + $0x48] ss:$16 sps:$4 sm:$0xff]   ;;  %v3148_v19 = vld [vmem:[#allocation4 + $0xc4] ss:$16 sps:$4 sm:$0xff]  }
  0x51   :  { %292 = vmatpush1.bf16.msra.mxu0 %v3135_v4  ;;  %335 = vmatpush1.bf16.msra.mxu1 %v3160_v14  ;;  %v3164_v20 = vld [vmem:[#allocation4 + $0x6c] ss:$16 sps:$4 sm:$0xff]   ;;  %v3150_v21 = vld [vmem:[#allocation4 + $0xc0] ss:$16 sps:$4 sm:$0xff]   ;;  %v3166_v22 = vld [vmem:[#allocation4 + $0x68] ss:$16 sps:$4 sm:$0xff]  }
  0x52   :  { %293 = vmatprep.subr.bf16.mxu0 %v3136_v5  ;;  %336 = vmatprep.subr.bf16.mxu1 %v3161_v16  ;;  %v3151_v23 = vld [vmem:[#allocation4 + $0xe4] ss:$16 sps:$4 sm:$0xff]   ;;  %v3167_v24 = vld [vmem:[#allocation4 + $0x8c] ss:$16 sps:$4 sm:$0xff]   ;;  %v3153_v27 = vld [vmem:[#allocation4 + $0xe0] ss:$16 sps:$4 sm:$0xff]  }
  0x53   :  { %v86_v25 = vld [vmem:[%s3917_s1] sm:$0xff]  ;;  %v3169_v28 = vld [vmem:[#allocation4 + $0x88] ss:$16 sps:$4 sm:$0xff]   ;;  %v3170_v30 = vld [vmem:[#allocation4 + $0xac] ss:$16 sps:$4 sm:$0xff]   ;;  %s3722_s9 = smov 117  }
  0x54   :  { %v88_v29 = vpack.c.bf16 %v87_v26, %v86_v25  ;;  %v3181_v31 = vld [vmem:[#allocation7 + $0x4] ss:$16 sps:$4 sm:$0xff]   ;;  %v3172_v33 = vld [vmem:[#allocation4 + $0xa8] ss:$16 sps:$4 sm:$0xff]   ;;  %v3173_v34 = vld [vmem:[#allocation4 + $0xcc] ss:$16 sps:$4 sm:$0xff]  }
  0x55   :  { %294 = vmatpush1.bf16.msra.mxu0 %v3138_v6  ;;  %337 = vmatpush1.bf16.msra.mxu1 %v3163_v18  ;;  %v3154_v32 = vld [vmem:[%s3916_s0] sm:$0xff]   ;;  %v3175_v37 = vld [vmem:[#allocation4 + $0xc8] ss:$16 sps:$4 sm:$0xff]   ;;  %v3176_v38 = vld [vmem:[#allocation4 + $0xec] ss:$16 sps:$4 sm:$0xff]   ;;  %vm408_vm8 = vcmask 958368  }
  0x56   :  { %295 = vmatprep.subr.bf16.mxu0 %v3139_v7  ;;  %338 = vmatprep.subr.bf16.mxu1 %v3164_v20  ;;  %v3179_v35 = vld [vmem:[#allocation7] ss:$16 sps:$4 sm:$0xff]   ;;  %v3187_v36 = vld [vmem:[#allocation7 + $0x24] ss:$16 sps:$4 sm:$0xff]   ;;  %v3178_v41 = vld [vmem:[#allocation4 + $0xe8] ss:$16 sps:$4 sm:$0xff]  }
  0x57   :  { %411 = vrot.lane.b32.xlu0 %v88_v29, %s3722_s9  ;;  %v3185_v39 = vld [vmem:[#allocation7 + $0x20] ss:$16 sps:$4 sm:$0xff]   ;;  %v3193_v40 = vld [vmem:[#allocation7 + $0x44] ss:$16 sps:$4 sm:$0xff]   ;;  %v3184_v42 = vld [vmem:[#allocation7 + $0xc] ss:$16 sps:$4 sm:$0xff]  }
  0x58   :  { %v3191_v43 = vld [vmem:[#allocation7 + $0x40] ss:$16 sps:$4 sm:$0xff]   ;;  %v3199_v44 = vld [vmem:[#allocation7 + $0x64] ss:$16 sps:$4 sm:$0xff]   ;;  %v3182_v45 = vld [vmem:[#allocation7 + $0x8] ss:$16 sps:$4 sm:$0xff]  }
  0x59   :  { %296 = vmatpush1.bf16.msra.mxu0 %v3141_v8  ;;  %339 = vmatpush1.bf16.msra.mxu1 %v3166_v22  ;;  %v3190_v46 = vld [vmem:[#allocation7 + $0x2c] ss:$16 sps:$4 sm:$0xff]   ;;  %v3197_v47 = vld [vmem:[#allocation7 + $0x60] ss:$16 sps:$4 sm:$0xff]   ;;  %v3205_v48 = vld [vmem:[#allocation7 + $0x84] ss:$16 sps:$4 sm:$0xff]  }
  0x5a   :  { %297 = vmatprep.subr.bf16.mxu0 %v3142_v9  ;;  %340 = vmatprep.subr.bf16.mxu1 %v3167_v24  ;;  %v3188_v49 = vld [vmem:[#allocation7 + $0x28] ss:$16 sps:$4 sm:$0xff]   ;;  %v3196_v50 = vld [vmem:[#allocation7 + $0x4c] ss:$16 sps:$4 sm:$0xff]   ;;  %v3203_v51 = vld [vmem:[#allocation7 + $0x80] ss:$16 sps:$4 sm:$0xff]  }
  0x5b   :  { %v3211_v52 = vld [vmem:[#allocation7 + $0xa4] ss:$16 sps:$4 sm:$0xff]   ;;  %v3194_v53 = vld [vmem:[#allocation7 + $0x48] ss:$16 sps:$4 sm:$0xff]   ;;  %v3202_v54 = vld [vmem:[#allocation7 + $0x6c] ss:$16 sps:$4 sm:$0xff]  }
  0x5c   :  { %v3209_v55 = vld [vmem:[#allocation7 + $0xa0] ss:$16 sps:$4 sm:$0xff]   ;;  %v3217_v56 = vld [vmem:[#allocation7 + $0xc4] ss:$16 sps:$4 sm:$0xff]   ;;  %v3200_v57 = vld [vmem:[#allocation7 + $0x68] ss:$16 sps:$4 sm:$0xff]  }
  0x5d   :  { %298 = vmatpush1.bf16.msra.mxu0 %v3144_v13  ;;  %341 = vmatpush1.bf16.msra.mxu1 %v3169_v28  ;;  %v3208_v58 = vld [vmem:[#allocation7 + $0x8c] ss:$16 sps:$4 sm:$0xff]   ;;  %v3215_v59 = vld [vmem:[#allocation7 + $0xc0] ss:$16 sps:$4 sm:$0xff]   ;;  %v3223_v60 = vld [vmem:[#allocation7 + $0xe4] ss:$16 sps:$4 sm:$0xff]  }
  0x5e   :  { %299 = vmatprep.subr.bf16.mxu0 %v3145_v15  ;;  %342 = vmatprep.subr.bf16.mxu1 %v3170_v30  ;;  %v3206_v61 = vld [vmem:[#allocation7 + $0x88] ss:$16 sps:$4 sm:$0xff]   ;;  %v3221_v62 = vld [vmem:[#allocation7 + $0xe0] ss:$16 sps:$4 sm:$0xff]   ;;  %v3214_v63 = vld [vmem:[#allocation7 + $0xac] ss:$16 sps:$4 sm:$0xff]  }
  0x5f   :  { %v3229_v0 = vld [vmem:[#allocation7 + $0x104] ss:$16 sps:$4 sm:$0xff]   ;;  %v3212_v1 = vld [vmem:[#allocation7 + $0xa8] ss:$16 sps:$4 sm:$0xff]   ;;  %v3227_v2 = vld [vmem:[#allocation7 + $0x100] ss:$16 sps:$4 sm:$0xff]  }
  0x60   :  { %v3220_v3 = vld [vmem:[#allocation7 + $0xcc] ss:$16 sps:$4 sm:$0xff]   ;;  %v3235_v4 = vld [vmem:[#allocation7 + $0x124] ss:$16 sps:$4 sm:$0xff]   ;;  %v3218_v5 = vld [vmem:[#allocation7 + $0xc8] ss:$16 sps:$4 sm:$0xff]  }
  0x61   :  { %300 = vmatpush1.bf16.msra.mxu0 %v3147_v17  ;;  %343 = vmatpush1.bf16.msra.mxu1 %v3172_v33  ;;  %v3233_v6 = vld [vmem:[#allocation7 + $0x120] ss:$16 sps:$4 sm:$0xff]   ;;  %v3226_v7 = vld [vmem:[#allocation7 + $0xec] ss:$16 sps:$4 sm:$0xff]   ;;  %v3241_v8 = vld [vmem:[#allocation7 + $0x144] ss:$16 sps:$4 sm:$0xff]  }
  0x62   :  { %301 = vmatprep.subr.bf16.mxu0 %v3148_v19  ;;  %344 = vmatprep.subr.bf16.mxu1 %v3173_v34  ;;  %v3224_v9 = vld [vmem:[#allocation7 + $0xe8] ss:$16 sps:$4 sm:$0xff]   ;;  %v3239_v10 = vld [vmem:[#allocation7 + $0x140] ss:$16 sps:$4 sm:$0xff]   ;;  %v3232_v11 = vld [vmem:[#allocation7 + $0x10c] ss:$16 sps:$4 sm:$0xff]  }
  0x63   :  { %v3247_v12 = vld [vmem:[#allocation7 + $0x164] ss:$16 sps:$4 sm:$0xff]   ;;  %v3230_v13 = vld [vmem:[#allocation7 + $0x108] ss:$16 sps:$4 sm:$0xff]   ;;  %v3245_v14 = vld [vmem:[#allocation7 + $0x160] ss:$16 sps:$4 sm:$0xff]  }
  0x64   :  { %v3238_v15 = vld [vmem:[#allocation7 + $0x12c] ss:$16 sps:$4 sm:$0xff]   ;;  %v3236_v16 = vld [vmem:[#allocation7 + $0x128] ss:$16 sps:$4 sm:$0xff]   ;;  %v3259_v25 = vld [vmem:[#allocation7 + $0x1a4] ss:$16 sps:$4 sm:$0xff]  }
  0x65   :  { %302 = vmatpush1.bf16.msra.mxu0 %v3150_v21  ;;  %345 = vmatpush1.bf16.msra.mxu1 %v3175_v37  ;;  %v3244_v17 = vld [vmem:[#allocation7 + $0x14c] ss:$16 sps:$4 sm:$0xff]   ;;  %v3242_v18 = vld [vmem:[#allocation7 + $0x148] ss:$16 sps:$4 sm:$0xff]   ;;  %v3253_v21 = vld [vmem:[#allocation7 + $0x184] ss:$16 sps:$4 sm:$0xff]  }
  0x66   :  { %303 = vmatprep.subr.bf16.mxu0 %v3151_v23  ;;  %346 = vmatprep.subr.bf16.mxu1 %v3176_v38  ;;  %v3250_v19 = vld [vmem:[#allocation7 + $0x16c] ss:$16 sps:$4 sm:$0xff]   ;;  %v3248_v20 = vld [vmem:[#allocation7 + $0x168] ss:$16 sps:$4 sm:$0xff]   ;;  %v3251_v23 = vld [vmem:[#allocation7 + $0x180] ss:$16 sps:$4 sm:$0xff]  }
  0x67   :  { %v3256_v22 = vld [vmem:[#allocation7 + $0x18c] ss:$16 sps:$4 sm:$0xff]   ;;  %v3254_v24 = vld [vmem:[#allocation7 + $0x188] ss:$16 sps:$4 sm:$0xff]   ;;  %v3265_v29 = vld [vmem:[#allocation7 + $0x1c4] ss:$16 sps:$4 sm:$0xff]  }
  0x68   :  { %v3262_v26 = vld [vmem:[#allocation7 + $0x1ac] ss:$16 sps:$4 sm:$0xff]   ;;  %v3260_v28 = vld [vmem:[#allocation7 + $0x1a8] ss:$16 sps:$4 sm:$0xff]   ;;  %v3271_v33 = vld [vmem:[#allocation7 + $0x1e4] ss:$16 sps:$4 sm:$0xff]  }
  0x69   :  { %304 = vmatpush1.bf16.msra.mxu0 %v3153_v27  ;;  %347 = vmatpush1.bf16.msra.mxu1 %v3178_v41  ;;  %v3257_v27 = vld [vmem:[#allocation7 + $0x1a0] ss:$16 sps:$4 sm:$0xff]   ;;  %v3268_v30 = vld [vmem:[#allocation7 + $0x1cc] ss:$16 sps:$4 sm:$0xff]   ;;  %v3277_v37 = vld [vmem:[#allocation7 + $0x204] ss:$16 sps:$4 sm:$0xff]  }
  0x6a   :  { %1188 = vmatprep.subr.bf16.mxu0 %v3181_v31  ;;  %1274 = vmatprep.subr.bf16.mxu1 %v3184_v42  ;;  %v3263_v31 = vld [vmem:[#allocation7 + $0x1c0] ss:$16 sps:$4 sm:$0xff]   ;;  %v3274_v34 = vld [vmem:[#allocation7 + $0x1ec] ss:$16 sps:$4 sm:$0xff]   ;;  %vm414_vm9 = vcmask 966568  }
  0x6b   :  { %v3280_v38 = vld [vmem:[#allocation7 + $0x20c] ss:$16 sps:$4 sm:$0xff]  }
  0x6c   :  { %322 = vmatmul.mubr.bf16.vlgmr.msra.gmra.mrb[0].mxu0 %v3154_v32  ;;  %365 = vmatmul.mubr.bf16.vlgmr.msra.gmra.mrb[0].mxu1 %v3154_v32  ;;  %v3266_v32 = vld [vmem:[#allocation7 + $0x1c8] ss:$16 sps:$4 sm:$0xff]  }
  0x6d   :  { %1189 = vmatpush1.bf16.msra.mxu0 %v3179_v35  ;;  %1275 = vmatpush1.bf16.msra.mxu1 %v3182_v45  ;;  %v3269_v35 = vld [vmem:[#allocation7 + $0x1e0] ss:$16 sps:$4 sm:$0xff]  }
  0x6e   :  { %1190 = vmatprep.subr.bf16.mxu0 %v3187_v36  ;;  %1276 = vmatprep.subr.bf16.mxu1 %v3190_v46  ;;  %v3272_v36 = vld [vmem:[#allocation7 + $0x1e8] ss:$16 sps:$4 sm:$0xff]  }
  0x71   :  { %1191 = vmatpush1.bf16.msra.mxu0 %v3185_v39  ;;  %1277 = vmatpush1.bf16.msra.mxu1 %v3188_v49  ;;  %v3850_v39 = vstv %s3922_s6  ;;  %s3724_s6 = smov [#allocation12]  }
  0x72   :  { %1192 = vmatprep.subr.bf16.mxu0 %v3193_v40  ;;  %1278 = vmatprep.subr.bf16.mxu1 %v3196_v50  ;;  %s2721_s10 = sshll.u32 %s3724_s6, 4  ;;  %s2722_s10 = int_to_ptr.vmem [resolvable:$true] %s2721_s10 }
  0x73   :  { %s3683_s11 = scalar_lea.vmem %s2722_s10, 256  ;;  %p3688_p5 = scmp.lt.s32.totalorder %s2722_s10, %s2722_s10 }
  0x74   :  { %p3684_p4 = scmp.ne.s32.totalorder %s2722_s10, %s3683_s11  ;;  %p3689_p6 = scmp.lt.s32.totalorder %s3683_s11, %s3683_s11 }
  0x75   :  { %1193 = vmatpush1.bf16.msra.mxu0 %v3191_v43  ;;  %1279 = vmatpush1.bf16.msra.mxu1 %v3194_v53 }
  0x76   :  { %1194 = vmatprep.subr.bf16.mxu0 %v3199_v44  ;;  %1280 = vmatprep.subr.bf16.mxu1 %v3202_v54  ;;  %v3275_v54 = vld [vmem:[#allocation7 + $0x200] ss:$16 sps:$4 sm:$0xff]   ;;  %p3690_p7 = por %p3689_p6, %p3688_p5 }
  0x78   :  { %p3691_p8 = pnand %p3690_p7, %p3684_p4 }
  0x79   :  { %1195 = vmatpush1.bf16.msra.mxu0 %v3197_v47  ;;  %1281 = vmatpush1.bf16.msra.mxu1 %v3200_v57  ;;  %v3286_v57 = vld [vmem:[#allocation7 + $0x22c] ss:$16 sps:$4 sm:$0xff]  }
  0x7a   :  { %1196 = vmatprep.subr.bf16.mxu0 %v3205_v48  ;;  %1282 = vmatprep.subr.bf16.mxu1 %v3208_v58  ;;  %v3281_v58 = vld [vmem:[#allocation7 + $0x220] ss:$16 sps:$4 sm:$0xff]  }
  0x7d   :  { %1197 = vmatpush1.bf16.msra.mxu0 %v3203_v51  ;;  %1283 = vmatpush1.bf16.msra.mxu1 %v3206_v61  ;;  %v3292_v61 = vld [vmem:[#allocation7 + $0x24c] ss:$16 sps:$4 sm:$0xff]  }
  0x7e   :  { %1198 = vmatprep.subr.bf16.mxu0 %v3211_v52  ;;  %1284 = vmatprep.subr.bf16.mxu1 %v3214_v63 }
  0x81   :  { %1199 = vmatpush1.bf16.msra.mxu0 %v3209_v55  ;;  %1285 = vmatpush1.bf16.msra.mxu1 %v3212_v1  ;;  %v3278_v55 = vld [vmem:[#allocation7 + $0x208] ss:$16 sps:$4 sm:$0xff]  }
  0x82   :  { %1200 = vmatprep.subr.bf16.mxu0 %v3217_v56  ;;  %1286 = vmatprep.subr.bf16.mxu1 %v3220_v3  ;;  %v3283_v56 = vld [vmem:[#allocation7 + $0x224] ss:$16 sps:$4 sm:$0xff]   ;;  %v3287_v3 = vld [vmem:[#allocation7 + $0x240] ss:$16 sps:$4 sm:$0xff]  }
  0x85   :  { %1201 = vmatpush1.bf16.msra.mxu0 %v3215_v59  ;;  %1287 = vmatpush1.bf16.msra.mxu1 %v3218_v5  ;;  %v3284_v59 = vld [vmem:[#allocation7 + $0x228] ss:$16 sps:$4 sm:$0xff]  }
  0x86   :  { %1202 = vmatprep.subr.bf16.mxu0 %v3223_v60  ;;  %1288 = vmatprep.subr.bf16.mxu1 %v3226_v7  ;;  %v3289_v60 = vld [vmem:[#allocation7 + $0x244] ss:$16 sps:$4 sm:$0xff]  }
  0x89   :  { %1203 = vmatpush1.bf16.msra.mxu0 %v3221_v62  ;;  %1289 = vmatpush1.bf16.msra.mxu1 %v3224_v9  ;;  %v3298_v9 = vld [vmem:[#allocation7 + $0x26c] ss:$16 sps:$4 sm:$0xff]  }
  0x8a   :  { %1204 = vmatprep.subr.bf16.mxu0 %v3229_v0  ;;  %1290 = vmatprep.subr.bf16.mxu1 %v3232_v11 }
  0x8d   :  { %1205 = vmatpush1.bf16.msra.mxu0 %v3227_v2  ;;  %1291 = vmatpush1.bf16.msra.mxu1 %v3230_v13  ;;  %v3293_v13 = vld [vmem:[#allocation7 + $0x260] ss:$16 sps:$4 sm:$0xff]  }
  0x8e   :  { %1206 = vmatprep.subr.bf16.mxu0 %v3235_v4  ;;  %1292 = vmatprep.subr.bf16.mxu1 %v3238_v15  ;;  %v3290_v4 = vld [vmem:[#allocation7 + $0x248] ss:$16 sps:$4 sm:$0xff]  }
  0x91   :  { %1207 = vmatpush1.bf16.msra.mxu0 %v3233_v6  ;;  %1293 = vmatpush1.bf16.msra.mxu1 %v3236_v16  ;;  %v3296_v16 = vld [vmem:[#allocation7 + $0x268] ss:$16 sps:$4 sm:$0xff]  }
  0x92   :  { %1208 = vmatprep.subr.bf16.mxu0 %v3241_v8  ;;  %1294 = vmatprep.subr.bf16.mxu1 %v3244_v17  ;;  %v3295_v8 = vld [vmem:[#allocation7 + $0x264] ss:$16 sps:$4 sm:$0xff]  }
  0x95   :  { %1209 = vmatpush1.bf16.msra.mxu0 %v3239_v10  ;;  %1295 = vmatpush1.bf16.msra.mxu1 %v3242_v18  ;;  %v3301_v18 = vld [vmem:[#allocation7 + $0x284] ss:$16 sps:$4 sm:$0xff]  }
  0x96   :  { %1210 = vmatprep.subr.bf16.mxu0 %v3247_v12  ;;  %1296 = vmatprep.subr.bf16.mxu1 %v3250_v19  ;;  %v3304_v19 = vld [vmem:[#allocation7 + $0x28c] ss:$16 sps:$4 sm:$0xff]  }
  0x99   :  { %1211 = vmatpush1.bf16.msra.mxu0 %v3245_v14  ;;  %1297 = vmatpush1.bf16.msra.mxu1 %v3248_v20 }
  0x9a   :  { %1212 = vmatprep.subr.bf16.mxu0 %v3253_v21  ;;  %1298 = vmatprep.subr.bf16.mxu1 %v3256_v22  ;;  %v3723_v21 = vmov 1065369472   ;;  %v3299_v22 = vld [vmem:[#allocation7 + $0x280] ss:$16 sps:$4 sm:$0xff]  }
  0x9d   :  { %1213 = vmatpush1.bf16.msra.mxu0 %v3251_v23  ;;  %1299 = vmatpush1.bf16.msra.mxu1 %v3254_v24  ;;  %v3302_v23 = vld [vmem:[#allocation7 + $0x288] ss:$16 sps:$4 sm:$0xff]   ;;  %v3307_v24 = vld [vmem:[#allocation7 + $0x2a4] ss:$16 sps:$4 sm:$0xff]  }
  0x9e   :  { %1214 = vmatprep.subr.bf16.mxu0 %v3259_v25  ;;  %1300 = vmatprep.subr.bf16.mxu1 %v3262_v26  ;;  %v3310_v25 = vld [vmem:[#allocation7 + $0x2ac] ss:$16 sps:$4 sm:$0xff]   ;;  %v3305_v26 = vld [vmem:[#allocation7 + $0x2a0] ss:$16 sps:$4 sm:$0xff]  }
  0xa1   :  { %1215 = vmatpush1.bf16.msra.mxu0 %v3257_v27  ;;  %1301 = vmatpush1.bf16.msra.mxu1 %v3260_v28  ;;  %v3308_v27 = vld [vmem:[#allocation7 + $0x2a8] ss:$16 sps:$4 sm:$0xff]   ;;  %v3313_v28 = vld [vmem:[#allocation7 + $0x2c4] ss:$16 sps:$4 sm:$0xff]  }
  0xa2   :  { %1216 = vmatprep.subr.bf16.mxu0 %v3265_v29  ;;  %1302 = vmatprep.subr.bf16.mxu1 %v3268_v30  ;;  %v3316_v29 = vld [vmem:[#allocation7 + $0x2cc] ss:$16 sps:$4 sm:$0xff]  }
  0xa5   :  { %1217 = vmatpush1.bf16.msra.mxu0 %v3263_v31  ;;  %1303 = vmatpush1.bf16.msra.mxu1 %v3266_v32  ;;  %v3311_v31 = vld [vmem:[#allocation7 + $0x2c0] ss:$16 sps:$4 sm:$0xff]   ;;  %v3314_v32 = vld [vmem:[#allocation7 + $0x2c8] ss:$16 sps:$4 sm:$0xff]  }
  0xa6   :  { %1218 = vmatprep.subr.bf16.mxu0 %v3271_v33  ;;  %1304 = vmatprep.subr.bf16.mxu1 %v3274_v34  ;;  %v3319_v33 = vld [vmem:[#allocation7 + $0x2e4] ss:$16 sps:$4 sm:$0xff]   ;;  %v3322_v34 = vld [vmem:[#allocation7 + $0x2ec] ss:$16 sps:$4 sm:$0xff]  }
  0xa9   :  { %1219 = vmatpush1.bf16.msra.mxu0 %v3269_v35  ;;  %1305 = vmatpush1.bf16.msra.mxu1 %v3272_v36  ;;  %v3317_v35 = vld [vmem:[#allocation7 + $0x2e0] ss:$16 sps:$4 sm:$0xff]   ;;  %v3320_v36 = vld [vmem:[#allocation7 + $0x2e8] ss:$16 sps:$4 sm:$0xff]  }
  0xaa   :  { %1231 = vmatprep.subr.bf16.mxu0 %v3277_v37  ;;  %1317 = vmatprep.subr.bf16.mxu1 %v3280_v38  ;;  %v3325_v37 = vld [vmem:[#allocation7 + $0x304] ss:$16 sps:$4 sm:$0xff]   ;;  %v3328_v38 = vld [vmem:[#allocation7 + $0x30c] ss:$16 sps:$4 sm:$0xff]  }
  0xc9   :  { %v3862_v20 = vpop.permute.xlu0 %411 }
 0x13f   :  { %v323_v40 = vpop.f32.mrb[0].mxu0  ;;  %v366_v62 = vpop.f32.mrb[0].mxu1 }
 0x140   :  { %v384_v41 = vmul.f32 %v3850_v39, %v323_v40  ;;  %v325_v42 = vpop.f32.mrb[1].mxu0  ;;  %vm375_vm0 = vcmp.ge.f32.partialorder %v323_v40, 0.0  ;;  %vm377_vm4 = vcmp.ge.f32.partialorder %v366_v62, 0.0  ;;  %v386_v63 = vmul.f32 %v3850_v39, %v366_v62  ;;  %v368_v0 = vpop.f32.mrb[1].mxu1 }
 0x141   :  { %v385_v43 = vmul.f32 %v3850_v39, %v325_v42  ;;  %v327_v44 = vpop.f32.mrb[2].mxu0  ;;  %vm376_vm1 = vcmp.ge.f32.partialorder %v325_v42, 0.0  ;;  %vm378_vm5 = vcmp.ge.f32.partialorder %v368_v0, 0.0  ;;  %v387_v1 = vmul.f32 %v3850_v39, %v368_v0  ;;  %v370_v2 = vpop.f32.mrb[2].mxu1 }
 0x142   :  { %vm379_vm2 = vcmp.ge.f32.partialorder %v327_v44, 0.0  ;;  %v388_v45 = vmul.f32 %v3850_v39, %v327_v44  ;;  %v329_v46 = vpop.f32.mrb[3].mxu0  ;;  %v392_v48 = vsel %vm375_vm0, %v323_v40, %v384_v41  ;;  %v394_v5 = vsel %vm377_vm4, %v366_v62, %v386_v63  ;;  %v372_v7 = vpop.f32.mrb[3].mxu1  ;;  %v3323_v40 = vld [vmem:[#allocation7 + $0x300] ss:$16 sps:$4 sm:$0xff]  }
 0x143   :  { %vm380_vm3 = vcmp.ge.f32.partialorder %v329_v46, 0.0  ;;  %v389_v47 = vmul.f32 %v3850_v39, %v329_v46  ;;  %v393_v50 = vsel %vm376_vm1, %v325_v42, %v385_v43  ;;  %vm381_vm6 = vcmp.ge.f32.partialorder %v370_v2, 0.0  ;;  %v3326_v41 = vld [vmem:[#allocation7 + $0x308] ss:$16 sps:$4 sm:$0xff]   ;;  %v3331_v42 = vld [vmem:[#allocation7 + $0x324] ss:$16 sps:$4 sm:$0xff]  }
 0x144   :  { %v396_v49 = vsel %vm379_vm2, %v327_v44, %v388_v45  ;;  %v390_v6 = vmul.f32 %v3850_v39, %v370_v2  ;;  %v395_v10 = vsel %vm378_vm5, %v368_v0, %v387_v1  ;;  %vm382_vm7 = vcmp.ge.f32.partialorder %v372_v7, 0.0  ;;  %v3334_v43 = vld [vmem:[#allocation7 + $0x32c] ss:$16 sps:$4 sm:$0xff]   ;;  %v3329_v44 = vld [vmem:[#allocation7 + $0x320] ss:$16 sps:$4 sm:$0xff]  }
 0x145   :  { %v400_v51 = vpack.c.bf16 %v396_v49, %v392_v48  ;;  %v397_v52 = vsel %vm380_vm3, %v329_v46, %v389_v47  ;;  %v391_v11 = vmul.f32 %v3850_v39, %v372_v7  ;;  %v3332_v45 = vld [vmem:[#allocation7 + $0x328] ss:$16 sps:$4 sm:$0xff]   ;;  %v3337_v46 = vld [vmem:[#allocation7 + $0x344] ss:$16 sps:$4 sm:$0xff]   ;;  %v3340_v47 = vld [vmem:[#allocation7 + $0x34c] ss:$16 sps:$4 sm:$0xff]  }
 0x146   :  { %v401_v53 = vpack.c.bf16 %v397_v52, %v393_v50  ;;  %v398_v12 = vsel %vm381_vm6, %v370_v2, %v390_v6  ;;  %v3335_v48 = vld [vmem:[#allocation7 + $0x340] ss:$16 sps:$4 sm:$0xff]   ;;  %v3338_v49 = vld [vmem:[#allocation7 + $0x348] ss:$16 sps:$4 sm:$0xff]   ;;  %v3343_v50 = vld [vmem:[#allocation7 + $0x364] ss:$16 sps:$4 sm:$0xff]  }
 0x147   :  { %v3860_v14 = vpack.c.bf16 %v398_v12, %v394_v5  ;;  %v399_v15 = vsel %vm382_vm7, %v372_v7, %v391_v11  ;;  %v3341_v52 = vld [vmem:[#allocation7 + $0x360] ss:$16 sps:$4 sm:$0xff]   ;;  %v3361_v62 = vld [vmem:[#allocation7 + $0x3c4] ss:$16 sps:$4 sm:$0xff]   ;;  %v3364_v63 = vld [vmem:[#allocation7 + $0x3cc] ss:$16 sps:$4 sm:$0xff]  }
 0x148   :  { %1220 = vmatprep.mubr.bf16.mxu0 %v401_v53  ;;  %1306 = vmatprep.mubr.bf16.mxu1 %v401_v53  ;;  %v403_v17 = vpack.c.bf16 %v399_v15, %v395_v10  ;;  %v3344_v53 = vld [vmem:[#allocation7 + $0x368] ss:$16 sps:$4 sm:$0xff]   ;;  %v3359_v0 = vld [vmem:[#allocation7 + $0x3c0] ss:$16 sps:$4 sm:$0xff]   ;;  %v3367_v2 = vld [vmem:[#allocation7 + $0x3e4] ss:$16 sps:$4 sm:$0xff]  }
 0x149   :  { %1221 = vmatmul.mubr.bf16.vlgmr.msra.gmra.mrb[4].mxu0 %v400_v51  ;;  %1307 = vmatmul.mubr.bf16.vlgmr.msra.gmra.mrb[4].mxu1 %v400_v51  ;;  %v3346_v51 = vld [vmem:[#allocation7 + $0x36c] ss:$16 sps:$4 sm:$0xff]   ;;  %v3362_v1 = vld [vmem:[#allocation7 + $0x3c8] ss:$16 sps:$4 sm:$0xff]   ;;  %v3373_v6 = vld [vmem:[#allocation9 + $0x4] ss:$16 sps:$4 sm:$0xff]  }
 0x14a   :  { %1232 = vmatpush1.bf16.msra.mxu0 %v3275_v54  ;;  %1318 = vmatpush1.bf16.msra.mxu1 %v3278_v55  ;;  %407 = vst [vmem:[#allocation2 + $0x18] sm:$0xff] %v403_v17  ;;  %v3349_v54 = vld [vmem:[#allocation7 + $0x384] ss:$16 sps:$4 sm:$0xff]   ;;  %v3352_v55 = vld [vmem:[#allocation7 + $0x38c] ss:$16 sps:$4 sm:$0xff]  }
 0x14b   :  { %1233 = vmatprep.subr.bf16.mxu0 %v3283_v56  ;;  %1319 = vmatprep.subr.bf16.mxu1 %v3286_v57  ;;  %409 = vst.msk [vmem:[#allocation2 + $0x18] sm:$0xff] %vm408_vm8, %v3723_v21  ;;  %v3347_v56 = vld [vmem:[#allocation7 + $0x380] ss:$16 sps:$4 sm:$0xff]   ;;  %v3350_v57 = vld [vmem:[#allocation7 + $0x388] ss:$16 sps:$4 sm:$0xff]  }
 0x14c   :  { %415 = vst.msk [vmem:[#allocation2 + $0x18] sm:$0xff] %vm414_vm9, %v3862_v20  ;;  %v3368_v5 = vld [vmem:[#allocation7 + $0x3e8] ss:$16 sps:$4 sm:$0xff]   ;;  %v3376_v7 = vld [vmem:[#allocation9 + $0xc] ss:$16 sps:$4 sm:$0xff]  }
 0x14d   :  { %v3379_v10 = vld [vmem:[#allocation9 + $0x24] ss:$16 sps:$4 sm:$0xff]   ;;  %v3382_v11 = vld [vmem:[#allocation9 + $0x2c] ss:$16 sps:$4 sm:$0xff]   ;;  %v3377_v12 = vld [vmem:[#allocation9 + $0x20] ss:$16 sps:$4 sm:$0xff]  }
 0x14e   :  { %1234 = vmatpush1.bf16.msra.mxu0 %v3281_v58  ;;  %1320 = vmatpush1.bf16.msra.mxu1 %v3284_v59  ;;  %v3355_v58 = vld [vmem:[#allocation7 + $0x3a4] ss:$16 sps:$4 sm:$0xff]   ;;  %v3358_v59 = vld [vmem:[#allocation7 + $0x3ac] ss:$16 sps:$4 sm:$0xff]   ;;  %v3383_v17 = vld [vmem:[#allocation9 + $0x40] ss:$16 sps:$4 sm:$0xff]  }
 0x14f   :  { %1235 = vmatprep.subr.bf16.mxu0 %v3289_v60  ;;  %1321 = vmatprep.subr.bf16.mxu1 %v3292_v61  ;;  %v3353_v60 = vld [vmem:[#allocation7 + $0x3a0] ss:$16 sps:$4 sm:$0xff]   ;;  %v3356_v61 = vld [vmem:[#allocation7 + $0x3a8] ss:$16 sps:$4 sm:$0xff]   ;;  %v3385_v15 = vld [vmem:[#allocation9 + $0x44] ss:$16 sps:$4 sm:$0xff]  }
 0x152   :  { %1236 = vmatpush1.bf16.msra.mxu0 %v3287_v3  ;;  %1322 = vmatpush1.bf16.msra.mxu1 %v3290_v4  ;;  %v3370_v3 = vld [vmem:[#allocation7 + $0x3ec] ss:$16 sps:$4 sm:$0xff]   ;;  %v3365_v4 = vld [vmem:[#allocation7 + $0x3e0] ss:$16 sps:$4 sm:$0xff]  }
 0x153   :  { %1237 = vmatprep.subr.bf16.mxu0 %v3295_v8  ;;  %1323 = vmatprep.subr.bf16.mxu1 %v3298_v9  ;;  %v419_v30 = vld [vmem:[#allocation2 + $0x18] sm:$0xff]  ;;  %v3371_v8 = vld [vmem:[#allocation9] ss:$16 sps:$4 sm:$0xff]  }
 0x154   :  { %1263 = vmatprep.mubr.bf16.mxu0 %v419_v30  ;;  %1349 = vmatprep.mubr.bf16.mxu1 %v419_v30  ;;  %v3374_v9 = vld [vmem:[#allocation9 + $0x8] ss:$16 sps:$4 sm:$0xff]   ;;  %v3401_v30 = vld [vmem:[#allocation9 + $0xa0] ss:$16 sps:$4 sm:$0xff]  }
 0x156   :  { %1238 = vmatpush1.bf16.msra.mxu0 %v3293_v13  ;;  %1324 = vmatpush1.bf16.msra.mxu1 %v3296_v16  ;;  %v3380_v13 = vld [vmem:[#allocation9 + $0x28] ss:$16 sps:$4 sm:$0xff]   ;;  %v3388_v16 = vld [vmem:[#allocation9 + $0x4c] ss:$16 sps:$4 sm:$0xff]  }
 0x157   :  { %1239 = vmatprep.subr.bf16.mxu0 %v3301_v18  ;;  %1325 = vmatprep.subr.bf16.mxu1 %v3304_v19  ;;  %v3386_v18 = vld [vmem:[#allocation9 + $0x48] ss:$16 sps:$4 sm:$0xff]   ;;  %v3391_v19 = vld [vmem:[#allocation9 + $0x64] ss:$16 sps:$4 sm:$0xff]  }
 0x15a   :  { %1240 = vmatpush1.bf16.msra.mxu0 %v3299_v22  ;;  %1326 = vmatpush1.bf16.msra.mxu1 %v3302_v23  ;;  %v3394_v22 = vld [vmem:[#allocation9 + $0x6c] ss:$16 sps:$4 sm:$0xff]   ;;  %v3389_v23 = vld [vmem:[#allocation9 + $0x60] ss:$16 sps:$4 sm:$0xff]  }
 0x15b   :  { %1241 = vmatprep.subr.bf16.mxu0 %v3307_v24  ;;  %1327 = vmatprep.subr.bf16.mxu1 %v3310_v25  ;;  %v3397_v24 = vld [vmem:[#allocation9 + $0x84] ss:$16 sps:$4 sm:$0xff]   ;;  %v3400_v25 = vld [vmem:[#allocation9 + $0x8c] ss:$16 sps:$4 sm:$0xff]  }
 0x15e   :  { %1242 = vmatpush1.bf16.msra.mxu0 %v3305_v26  ;;  %1328 = vmatpush1.bf16.msra.mxu1 %v3308_v27  ;;  %v3395_v26 = vld [vmem:[#allocation9 + $0x80] ss:$16 sps:$4 sm:$0xff]   ;;  %v3398_v27 = vld [vmem:[#allocation9 + $0x88] ss:$16 sps:$4 sm:$0xff]  }
 0x15f   :  { %1243 = vmatprep.subr.bf16.mxu0 %v3313_v28  ;;  %1329 = vmatprep.subr.bf16.mxu1 %v3316_v29  ;;  %v3403_v28 = vld [vmem:[#allocation9 + $0xa4] ss:$16 sps:$4 sm:$0xff]   ;;  %v3406_v29 = vld [vmem:[#allocation9 + $0xac] ss:$16 sps:$4 sm:$0xff]  }
 0x162   :  { %1244 = vmatpush1.bf16.msra.mxu0 %v3311_v31  ;;  %1330 = vmatpush1.bf16.msra.mxu1 %v3314_v32  ;;  %v3404_v31 = vld [vmem:[#allocation9 + $0xa8] ss:$16 sps:$4 sm:$0xff]   ;;  %v3409_v32 = vld [vmem:[#allocation9 + $0xc4] ss:$16 sps:$4 sm:$0xff]  }
 0x163   :  { %1245 = vmatprep.subr.bf16.mxu0 %v3319_v33  ;;  %1331 = vmatprep.subr.bf16.mxu1 %v3322_v34  ;;  %v3412_v33 = vld [vmem:[#allocation9 + $0xcc] ss:$16 sps:$4 sm:$0xff]   ;;  %v3407_v34 = vld [vmem:[#allocation9 + $0xc0] ss:$16 sps:$4 sm:$0xff]  }
 0x166   :  { %1246 = vmatpush1.bf16.msra.mxu0 %v3317_v35  ;;  %1332 = vmatpush1.bf16.msra.mxu1 %v3320_v36  ;;  %v3410_v35 = vld [vmem:[#allocation9 + $0xc8] ss:$16 sps:$4 sm:$0xff]   ;;  %v3415_v36 = vld [vmem:[#allocation9 + $0xe4] ss:$16 sps:$4 sm:$0xff]  }
 0x167   :  { %1247 = vmatprep.subr.bf16.mxu0 %v3325_v37  ;;  %1333 = vmatprep.subr.bf16.mxu1 %v3328_v38  ;;  %v3418_v37 = vld [vmem:[#allocation9 + $0xec] ss:$16 sps:$4 sm:$0xff]   ;;  %v3413_v38 = vld [vmem:[#allocation9 + $0xe0] ss:$16 sps:$4 sm:$0xff]  }
 0x16a   :  { %1248 = vmatpush1.bf16.msra.mxu0 %v3323_v40  ;;  %1334 = vmatpush1.bf16.msra.mxu1 %v3326_v41  ;;  %v3416_v40 = vld [vmem:[#allocation9 + $0xe8] ss:$16 sps:$4 sm:$0xff]   ;;  %v3421_v41 = vld [vmem:[#allocation9 + $0x104] ss:$16 sps:$4 sm:$0xff]  }
 0x16b   :  { %1249 = vmatprep.subr.bf16.mxu0 %v3331_v42  ;;  %1335 = vmatprep.subr.bf16.mxu1 %v3334_v43  ;;  %v3424_v42 = vld [vmem:[#allocation9 + $0x10c] ss:$16 sps:$4 sm:$0xff]   ;;  %v3419_v43 = vld [vmem:[#allocation9 + $0x100] ss:$16 sps:$4 sm:$0xff]  }
 0x16e   :  { %1250 = vmatpush1.bf16.msra.mxu0 %v3329_v44  ;;  %1336 = vmatpush1.bf16.msra.mxu1 %v3332_v45  ;;  %v3422_v44 = vld [vmem:[#allocation9 + $0x108] ss:$16 sps:$4 sm:$0xff]   ;;  %v3427_v45 = vld [vmem:[#allocation9 + $0x124] ss:$16 sps:$4 sm:$0xff]  }
 0x16f   :  { %1251 = vmatprep.subr.bf16.mxu0 %v3337_v46  ;;  %1337 = vmatprep.subr.bf16.mxu1 %v3340_v47  ;;  %v3430_v46 = vld [vmem:[#allocation9 + $0x12c] ss:$16 sps:$4 sm:$0xff]   ;;  %v3425_v47 = vld [vmem:[#allocation9 + $0x120] ss:$16 sps:$4 sm:$0xff]  }
 0x172   :  { %1252 = vmatpush1.bf16.msra.mxu0 %v3335_v48  ;;  %1338 = vmatpush1.bf16.msra.mxu1 %v3338_v49  ;;  %v3428_v48 = vld [vmem:[#allocation9 + $0x128] ss:$16 sps:$4 sm:$0xff]   ;;  %v3433_v49 = vld [vmem:[#allocation9 + $0x144] ss:$16 sps:$4 sm:$0xff]  }
 0x173   :  { %1253 = vmatprep.subr.bf16.mxu0 %v3343_v50  ;;  %1339 = vmatprep.subr.bf16.mxu1 %v3346_v51  ;;  %v3436_v50 = vld [vmem:[#allocation9 + $0x14c] ss:$16 sps:$4 sm:$0xff]   ;;  %v3431_v51 = vld [vmem:[#allocation9 + $0x140] ss:$16 sps:$4 sm:$0xff]  }
 0x176   :  { %1254 = vmatpush1.bf16.msra.mxu0 %v3341_v52  ;;  %1340 = vmatpush1.bf16.msra.mxu1 %v3344_v53  ;;  %v3434_v52 = vld [vmem:[#allocation9 + $0x148] ss:$16 sps:$4 sm:$0xff]   ;;  %v3439_v53 = vld [vmem:[#allocation9 + $0x164] ss:$16 sps:$4 sm:$0xff]  }
 0x177   :  { %1255 = vmatprep.subr.bf16.mxu0 %v3349_v54  ;;  %1341 = vmatprep.subr.bf16.mxu1 %v3352_v55  ;;  %v3442_v54 = vld [vmem:[#allocation9 + $0x16c] ss:$16 sps:$4 sm:$0xff]   ;;  %v3437_v55 = vld [vmem:[#allocation9 + $0x160] ss:$16 sps:$4 sm:$0xff]  }
 0x17a   :  { %1256 = vmatpush1.bf16.msra.mxu0 %v3347_v56  ;;  %1342 = vmatpush1.bf16.msra.mxu1 %v3350_v57  ;;  %v3440_v56 = vld [vmem:[#allocation9 + $0x168] ss:$16 sps:$4 sm:$0xff]   ;;  %v3445_v57 = vld [vmem:[#allocation9 + $0x184] ss:$16 sps:$4 sm:$0xff]  }
 0x17b   :  { %1257 = vmatprep.subr.bf16.mxu0 %v3355_v58  ;;  %1343 = vmatprep.subr.bf16.mxu1 %v3358_v59  ;;  %v3448_v58 = vld [vmem:[#allocation9 + $0x18c] ss:$16 sps:$4 sm:$0xff]   ;;  %v3443_v59 = vld [vmem:[#allocation9 + $0x180] ss:$16 sps:$4 sm:$0xff]  }
 0x17e   :  { %1258 = vmatpush1.bf16.msra.mxu0 %v3353_v60  ;;  %1344 = vmatpush1.bf16.msra.mxu1 %v3356_v61  ;;  %v3446_v60 = vld [vmem:[#allocation9 + $0x188] ss:$16 sps:$4 sm:$0xff]   ;;  %v3451_v61 = vld [vmem:[#allocation9 + $0x1a4] ss:$16 sps:$4 sm:$0xff]  }
 0x17f   :  { %1259 = vmatprep.subr.bf16.mxu0 %v3361_v62  ;;  %1345 = vmatprep.subr.bf16.mxu1 %v3364_v63  ;;  %v3454_v62 = vld [vmem:[#allocation9 + $0x1ac] ss:$16 sps:$4 sm:$0xff]   ;;  %v3449_v63 = vld [vmem:[#allocation9 + $0x1a0] ss:$16 sps:$4 sm:$0xff]  }
 0x182   :  { %1260 = vmatpush1.bf16.msra.mxu0 %v3359_v0  ;;  %1346 = vmatpush1.bf16.msra.mxu1 %v3362_v1  ;;  %v3452_v0 = vld [vmem:[#allocation9 + $0x1a8] ss:$16 sps:$4 sm:$0xff]   ;;  %v3457_v1 = vld [vmem:[#allocation9 + $0x1c4] ss:$16 sps:$4 sm:$0xff]  }
 0x183   :  { %1261 = vmatprep.subr.bf16.mxu0 %v3367_v2  ;;  %1347 = vmatprep.subr.bf16.mxu1 %v3370_v3  ;;  %v3460_v2 = vld [vmem:[#allocation9 + $0x1cc] ss:$16 sps:$4 sm:$0xff]   ;;  %v3455_v3 = vld [vmem:[#allocation9 + $0x1c0] ss:$16 sps:$4 sm:$0xff]  }
 0x186   :  { %1262 = vmatpush1.bf16.msra.mxu0 %v3365_v4  ;;  %1348 = vmatpush1.bf16.msra.mxu1 %v3368_v5  ;;  %v3458_v4 = vld [vmem:[#allocation9 + $0x1c8] ss:$16 sps:$4 sm:$0xff]   ;;  %v3463_v5 = vld [vmem:[#allocation9 + $0x1e4] ss:$16 sps:$4 sm:$0xff]  }
 0x187   :  { %2166 = vmatprep.subr.bf16.mxu0 %v3373_v6  ;;  %2252 = vmatprep.subr.bf16.mxu1 %v3376_v7  ;;  %v3466_v6 = vld [vmem:[#allocation9 + $0x1ec] ss:$16 sps:$4 sm:$0xff]   ;;  %v3461_v7 = vld [vmem:[#allocation9 + $0x1e0] ss:$16 sps:$4 sm:$0xff]  }
 0x189   :  { %1264 = vmatmul.mubr.bf16.vlgmr.msra.gmra.mrb[4].mxu0 %v3860_v14  ;;  %1350 = vmatmul.mubr.bf16.vlgmr.msra.gmra.mrb[4].mxu1 %v3860_v14  ;;  %v3392_v14 = vld [vmem:[#allocation9 + $0x68] ss:$16 sps:$4 sm:$0xff]  }
 0x18a   :  { %2167 = vmatpush1.bf16.msra.mxu0 %v3371_v8  ;;  %2253 = vmatpush1.bf16.msra.mxu1 %v3374_v9  ;;  %v3464_v8 = vld [vmem:[#allocation9 + $0x1e8] ss:$16 sps:$4 sm:$0xff]   ;;  %v3469_v9 = vld [vmem:[#allocation9 + $0x204] ss:$16 sps:$4 sm:$0xff]  }
 0x18b   :  { %2168 = vmatprep.subr.bf16.mxu0 %v3379_v10  ;;  %2254 = vmatprep.subr.bf16.mxu1 %v3382_v11  ;;  %v3472_v10 = vld [vmem:[#allocation9 + $0x20c] ss:$16 sps:$4 sm:$0xff]  }
 0x18e   :  { %2169 = vmatpush1.bf16.msra.mxu0 %v3377_v12  ;;  %2255 = vmatpush1.bf16.msra.mxu1 %v3380_v13 }
 0x18f   :  { %2170 = vmatprep.subr.bf16.mxu0 %v3385_v15  ;;  %2256 = vmatprep.subr.bf16.mxu1 %v3388_v16 }
 0x192   :  { %2171 = vmatpush1.bf16.msra.mxu0 %v3383_v17  ;;  %2257 = vmatpush1.bf16.msra.mxu1 %v3386_v18 }
 0x193   :  { %2172 = vmatprep.subr.bf16.mxu0 %v3391_v19  ;;  %2258 = vmatprep.subr.bf16.mxu1 %v3394_v22 }
 0x196   :  { %2173 = vmatpush1.bf16.msra.mxu0 %v3389_v23  ;;  %2259 = vmatpush1.bf16.msra.mxu1 %v3392_v14 }
 0x197   :  { %2174 = vmatprep.subr.bf16.mxu0 %v3397_v24  ;;  %2260 = vmatprep.subr.bf16.mxu1 %v3400_v25 }
 0x19a   :  { %2175 = vmatpush1.bf16.msra.mxu0 %v3395_v26  ;;  %2261 = vmatpush1.bf16.msra.mxu1 %v3398_v27 }
 0x19b   :  { %2176 = vmatprep.subr.bf16.mxu0 %v3403_v28  ;;  %2262 = vmatprep.subr.bf16.mxu1 %v3406_v29 }
 0x19e   :  { %2177 = vmatpush1.bf16.msra.mxu0 %v3401_v30  ;;  %2263 = vmatpush1.bf16.msra.mxu1 %v3404_v31 }
 0x19f   :  { %2178 = vmatprep.subr.bf16.mxu0 %v3409_v32  ;;  %2264 = vmatprep.subr.bf16.mxu1 %v3412_v33 }
 0x1a2   :  { %2179 = vmatpush1.bf16.msra.mxu0 %v3407_v34  ;;  %2265 = vmatpush1.bf16.msra.mxu1 %v3410_v35 }
 0x1a3   :  { %2180 = vmatprep.subr.bf16.mxu0 %v3415_v36  ;;  %2266 = vmatprep.subr.bf16.mxu1 %v3418_v37 }
 0x1a6   :  { %2181 = vmatpush1.bf16.msra.mxu0 %v3413_v38  ;;  %2267 = vmatpush1.bf16.msra.mxu1 %v3416_v40 }
 0x1a7   :  { %2182 = vmatprep.subr.bf16.mxu0 %v3421_v41  ;;  %2268 = vmatprep.subr.bf16.mxu1 %v3424_v42  ;;  %v3467_v41 = vld [vmem:[#allocation9 + $0x200] ss:$16 sps:$4 sm:$0xff]   ;;  %v3470_v42 = vld [vmem:[#allocation9 + $0x208] ss:$16 sps:$4 sm:$0xff]  }
 0x1aa   :  { %2183 = vmatpush1.bf16.msra.mxu0 %v3419_v43  ;;  %2269 = vmatpush1.bf16.msra.mxu1 %v3422_v44  ;;  %v3475_v44 = vld [vmem:[#allocation9 + $0x224] ss:$16 sps:$4 sm:$0xff]  }
 0x1ab   :  { %2184 = vmatprep.subr.bf16.mxu0 %v3427_v45  ;;  %2270 = vmatprep.subr.bf16.mxu1 %v3430_v46  ;;  %v3478_v45 = vld [vmem:[#allocation9 + $0x22c] ss:$16 sps:$4 sm:$0xff]   ;;  %v3473_v46 = vld [vmem:[#allocation9 + $0x220] ss:$16 sps:$4 sm:$0xff]  }
 0x1ae   :  { %2185 = vmatpush1.bf16.msra.mxu0 %v3425_v47  ;;  %2271 = vmatpush1.bf16.msra.mxu1 %v3428_v48  ;;  %v3476_v47 = vld [vmem:[#allocation9 + $0x228] ss:$16 sps:$4 sm:$0xff]   ;;  %v3481_v48 = vld [vmem:[#allocation9 + $0x244] ss:$16 sps:$4 sm:$0xff]  }
 0x1af   :  { %2186 = vmatprep.subr.bf16.mxu0 %v3433_v49  ;;  %2272 = vmatprep.subr.bf16.mxu1 %v3436_v50  ;;  %v3484_v49 = vld [vmem:[#allocation9 + $0x24c] ss:$16 sps:$4 sm:$0xff]   ;;  %v3479_v50 = vld [vmem:[#allocation9 + $0x240] ss:$16 sps:$4 sm:$0xff]  }
 0x1b2   :  { %2187 = vmatpush1.bf16.msra.mxu0 %v3431_v51  ;;  %2273 = vmatpush1.bf16.msra.mxu1 %v3434_v52  ;;  %v3482_v51 = vld [vmem:[#allocation9 + $0x248] ss:$16 sps:$4 sm:$0xff]   ;;  %v3487_v52 = vld [vmem:[#allocation9 + $0x264] ss:$16 sps:$4 sm:$0xff]  }
 0x1b3   :  { %2188 = vmatprep.subr.bf16.mxu0 %v3439_v53  ;;  %2274 = vmatprep.subr.bf16.mxu1 %v3442_v54  ;;  %v3490_v53 = vld [vmem:[#allocation9 + $0x26c] ss:$16 sps:$4 sm:$0xff]  }
 0x1b6   :  { %2189 = vmatpush1.bf16.msra.mxu0 %v3437_v55  ;;  %2275 = vmatpush1.bf16.msra.mxu1 %v3440_v56  ;;  %v3485_v55 = vld [vmem:[#allocation9 + $0x260] ss:$16 sps:$4 sm:$0xff]   ;;  %v3488_v56 = vld [vmem:[#allocation9 + $0x268] ss:$16 sps:$4 sm:$0xff]  }
 0x1b7   :  { %2190 = vmatprep.subr.bf16.mxu0 %v3445_v57  ;;  %2276 = vmatprep.subr.bf16.mxu1 %v3448_v58  ;;  %v3493_v57 = vld [vmem:[#allocation9 + $0x284] ss:$16 sps:$4 sm:$0xff]   ;;  %v3496_v58 = vld [vmem:[#allocation9 + $0x28c] ss:$16 sps:$4 sm:$0xff]  }
 0x1ba   :  { %2191 = vmatpush1.bf16.msra.mxu0 %v3443_v59  ;;  %2277 = vmatpush1.bf16.msra.mxu1 %v3446_v60  ;;  %v3491_v59 = vld [vmem:[#allocation9 + $0x280] ss:$16 sps:$4 sm:$0xff]   ;;  %v3494_v60 = vld [vmem:[#allocation9 + $0x288] ss:$16 sps:$4 sm:$0xff]  }
 0x1bb   :  { %2192 = vmatprep.subr.bf16.mxu0 %v3451_v61  ;;  %2278 = vmatprep.subr.bf16.mxu1 %v3454_v62  ;;  %v3499_v61 = vld [vmem:[#allocation9 + $0x2a4] ss:$16 sps:$4 sm:$0xff]   ;;  %v3502_v62 = vld [vmem:[#allocation9 + $0x2ac] ss:$16 sps:$4 sm:$0xff]  }
 0x1be   :  { %2193 = vmatpush1.bf16.msra.mxu0 %v3449_v63  ;;  %2279 = vmatpush1.bf16.msra.mxu1 %v3452_v0  ;;  %v3497_v63 = vld [vmem:[#allocation9 + $0x2a0] ss:$16 sps:$4 sm:$0xff]   ;;  %v3500_v0 = vld [vmem:[#allocation9 + $0x2a8] ss:$16 sps:$4 sm:$0xff]  }
 0x1bf   :  { %2194 = vmatprep.subr.bf16.mxu0 %v3457_v1  ;;  %2280 = vmatprep.subr.bf16.mxu1 %v3460_v2  ;;  %v3505_v1 = vld [vmem:[#allocation9 + $0x2c4] ss:$16 sps:$4 sm:$0xff]   ;;  %v3508_v2 = vld [vmem:[#allocation9 + $0x2cc] ss:$16 sps:$4 sm:$0xff]  }
 0x1c2   :  { %2195 = vmatpush1.bf16.msra.mxu0 %v3455_v3  ;;  %2281 = vmatpush1.bf16.msra.mxu1 %v3458_v4  ;;  %v3503_v3 = vld [vmem:[#allocation9 + $0x2c0] ss:$16 sps:$4 sm:$0xff]   ;;  %v3506_v4 = vld [vmem:[#allocation9 + $0x2c8] ss:$16 sps:$4 sm:$0xff]  }
 0x1c3   :  { %2196 = vmatprep.subr.bf16.mxu0 %v3463_v5  ;;  %2282 = vmatprep.subr.bf16.mxu1 %v3466_v6  ;;  %v3511_v5 = vld [vmem:[#allocation9 + $0x2e4] ss:$16 sps:$4 sm:$0xff]   ;;  %v3514_v6 = vld [vmem:[#allocation9 + $0x2ec] ss:$16 sps:$4 sm:$0xff]  }
 0x1c6   :  { %2197 = vmatpush1.bf16.msra.mxu0 %v3461_v7  ;;  %2283 = vmatpush1.bf16.msra.mxu1 %v3464_v8  ;;  %v3509_v7 = vld [vmem:[#allocation9 + $0x2e0] ss:$16 sps:$4 sm:$0xff]   ;;  %v3512_v8 = vld [vmem:[#allocation9 + $0x2e8] ss:$16 sps:$4 sm:$0xff]  }
 0x1c7   :  { %2209 = vmatprep.subr.bf16.mxu0 %v3469_v9  ;;  %2295 = vmatprep.subr.bf16.mxu1 %v3472_v10  ;;  %v3517_v9 = vld [vmem:[#allocation9 + $0x304] ss:$16 sps:$4 sm:$0xff]   ;;  %v3520_v10 = vld [vmem:[#allocation9 + $0x30c] ss:$16 sps:$4 sm:$0xff]  }
 0x25c   :  { %v1265_v11 = vpop.f32.mrb[4].mxu0  ;;  %v1351_v12 = vpop.f32.mrb[4].mxu1 }
 0x25d   :  { %vm1360_vm10 = vcmp.ge.f32.partialorder %v1265_v11, 0.0  ;;  %v1368_v13 = vmul.f32 %v1265_v11, %v3850_v39  ;;  %v1267_v15 = vpop.f32.mrb[5].mxu0  ;;  %v1353_v16 = vpop.f32.mrb[5].mxu1  ;;  %vm1362_vm11 = vcmp.ge.f32.partialorder %v1351_v12, 0.0  ;;  %v1370_v17 = vmul.f32 %v1351_v12, %v3850_v39 }
 0x25e   :  { %vm1361_vm12 = vcmp.ge.f32.partialorder %v1267_v15, 0.0  ;;  %v1269_v18 = vpop.f32.mrb[6].mxu0  ;;  %v1355_v19 = vpop.f32.mrb[6].mxu1  ;;  %v1369_v22 = vmul.f32 %v1267_v15, %v3850_v39  ;;  %vm1363_vm13 = vcmp.ge.f32.partialorder %v1353_v16, 0.0  ;;  %v1371_v26 = vmul.f32 %v1353_v16, %v3850_v39 }
 0x25f   :  { %vm1364_vm14 = vcmp.ge.f32.partialorder %v1269_v18, 0.0  ;;  %v1372_v23 = vmul.f32 %v1269_v18, %v3850_v39  ;;  %v1271_v14 = vpop.f32.mrb[7].mxu0  ;;  %v1357_v24 = vpop.f32.mrb[7].mxu1  ;;  %v1376_v25 = vsel %vm1360_vm10, %v1265_v11, %v1368_v13  ;;  %vm1366_vm15 = vcmp.ge.f32.partialorder %v1355_v19, 0.0  ;;  %v3515_v11 = vld [vmem:[#allocation9 + $0x300] ss:$16 sps:$4 sm:$0xff]  }
 0x260   :  { %v1374_v27 = vmul.f32 %v1355_v19, %v3850_v39  ;;  %vm1365_vm0 = vcmp.ge.f32.partialorder %v1271_v14, 0.0  ;;  %v1373_v29 = vmul.f32 %v1271_v14, %v3850_v39  ;;  %vm1367_vm1 = vcmp.ge.f32.partialorder %v1357_v24, 0.0  ;;  %v3523_v13 = vld [vmem:[#allocation9 + $0x324] ss:$16 sps:$4 sm:$0xff]  }
 0x261   :  { %v1380_v28 = vsel %vm1364_vm14, %v1269_v18, %v1372_v23  ;;  %v1378_v30 = vsel %vm1362_vm11, %v1351_v12, %v1370_v17  ;;  %v1375_v33 = vmul.f32 %v1357_v24, %v3850_v39  ;;  %v1377_v34 = vsel %vm1361_vm12, %v1267_v15, %v1369_v22  ;;  %v3518_v12 = vld [vmem:[#allocation9 + $0x308] ss:$16 sps:$4 sm:$0xff]   ;;  %v3526_v15 = vld [vmem:[#allocation9 + $0x32c] ss:$16 sps:$4 sm:$0xff]   ;;  %v3529_v18 = vld [vmem:[#allocation9 + $0x344] ss:$16 sps:$4 sm:$0xff]  }
 0x262   :  { %v1384_v31 = vpack.c.bf16 %v1380_v28, %v1376_v25  ;;  %v1382_v32 = vsel %vm1366_vm15, %v1355_v19, %v1374_v27  ;;  %v1381_v36 = vsel %vm1365_vm0, %v1271_v14, %v1373_v29  ;;  %v1379_v37 = vsel %vm1363_vm13, %v1353_v16, %v1371_v26  ;;  %v3521_v16 = vld [vmem:[#allocation9 + $0x320] ss:$16 sps:$4 sm:$0xff]   ;;  %v3524_v17 = vld [vmem:[#allocation9 + $0x328] ss:$16 sps:$4 sm:$0xff]   ;;  %v3532_v19 = vld [vmem:[#allocation9 + $0x34c] ss:$16 sps:$4 sm:$0xff]  }
 0x263   :  { %v3880_v35 = vpack.c.bf16 %v1382_v32, %v1378_v30  ;;  %v1385_v38 = vpack.c.bf16 %v1381_v36, %v1377_v34  ;;  %v1383_v40 = vsel %vm1367_vm1, %v1357_v24, %v1375_v33  ;;  %v3527_v22 = vld [vmem:[#allocation9 + $0x340] ss:$16 sps:$4 sm:$0xff]   ;;  %v3530_v23 = vld [vmem:[#allocation9 + $0x348] ss:$16 sps:$4 sm:$0xff]   ;;  %v3535_v14 = vld [vmem:[#allocation9 + $0x364] ss:$16 sps:$4 sm:$0xff]  }
 0x264   :  { %v1387_v43 = vpack.c.bf16 %v1383_v40, %v1379_v37  ;;  %v3538_v24 = vld [vmem:[#allocation9 + $0x36c] ss:$16 sps:$4 sm:$0xff]   ;;  %v3533_v25 = vld [vmem:[#allocation9 + $0x360] ss:$16 sps:$4 sm:$0xff]   ;;  %v3536_v26 = vld [vmem:[#allocation9 + $0x368] ss:$16 sps:$4 sm:$0xff]  }
 0x265   :  { %2198 = vmatprep.mubr.bf16.mxu0 %v1385_v38  ;;  %2284 = vmatprep.mubr.bf16.mxu1 %v1385_v38  ;;  %v3541_v27 = vld [vmem:[#allocation9 + $0x384] ss:$16 sps:$4 sm:$0xff]   ;;  %v3544_v28 = vld [vmem:[#allocation9 + $0x38c] ss:$16 sps:$4 sm:$0xff]   ;;  %v3539_v29 = vld [vmem:[#allocation9 + $0x380] ss:$16 sps:$4 sm:$0xff]  }
 0x266   :  { %1391 = vst [vmem:[#allocation2 + $0x18] sm:$0xff] %v1387_v43  ;;  %2199 = vmatmul.mubr.bf16.vlgmr.msra.gmra.mrb[8].mxu0 %v1384_v31  ;;  %2285 = vmatmul.mubr.bf16.vlgmr.msra.gmra.mrb[8].mxu1 %v1384_v31  ;;  %v3542_v30 = vld [vmem:[#allocation9 + $0x388] ss:$16 sps:$4 sm:$0xff]   ;;  %v3547_v31 = vld [vmem:[#allocation9 + $0x3a4] ss:$16 sps:$4 sm:$0xff]  }
 0x267   :  { %1392 = vst.msk [vmem:[#allocation2 + $0x18] sm:$0xff] %vm408_vm8, %v3723_v21  ;;  %2210 = vmatpush1.bf16.msra.mxu0 %v3467_v41  ;;  %2296 = vmatpush1.bf16.msra.mxu1 %v3470_v42  ;;  %v3550_v32 = vld [vmem:[#allocation9 + $0x3ac] ss:$16 sps:$4 sm:$0xff]   ;;  %v3545_v33 = vld [vmem:[#allocation9 + $0x3a0] ss:$16 sps:$4 sm:$0xff]  }
 0x268   :  { %1393 = vst.msk [vmem:[#allocation2 + $0x18] sm:$0xff] %vm414_vm9, %v3862_v20  ;;  %2211 = vmatprep.subr.bf16.mxu0 %v3475_v44  ;;  %2297 = vmatprep.subr.bf16.mxu1 %v3478_v45  ;;  %v3548_v34 = vld [vmem:[#allocation9 + $0x3a8] ss:$16 sps:$4 sm:$0xff]   ;;  %v3553_v36 = vld [vmem:[#allocation9 + $0x3c4] ss:$16 sps:$4 sm:$0xff]  }
 0x269   :  { %v3556_v37 = vld [vmem:[#allocation9 + $0x3cc] ss:$16 sps:$4 sm:$0xff]   ;;  %v3551_v38 = vld [vmem:[#allocation9 + $0x3c0] ss:$16 sps:$4 sm:$0xff]   ;;  %v3554_v40 = vld [vmem:[#allocation9 + $0x3c8] ss:$16 sps:$4 sm:$0xff]  }
 0x26a   :  { %v3559_v41 = vld [vmem:[#allocation9 + $0x3e4] ss:$16 sps:$4 sm:$0xff]   ;;  %v3562_v42 = vld [vmem:[#allocation9 + $0x3ec] ss:$16 sps:$4 sm:$0xff]   ;;  %v3557_v43 = vld [vmem:[#allocation9 + $0x3e0] ss:$16 sps:$4 sm:$0xff]  }
 0x26b   :  { %2212 = vmatpush1.bf16.msra.mxu0 %v3473_v46  ;;  %2298 = vmatpush1.bf16.msra.mxu1 %v3476_v47  ;;  %v3560_v44 = vld [vmem:[#allocation9 + $0x3e8] ss:$16 sps:$4 sm:$0xff]   ;;  %v3563_v45 = vld [vmem:[#allocation10 + $0x40] sm:$0xff]  }
 0x26c   :  { %2213 = vmatprep.subr.bf16.mxu0 %v3481_v48  ;;  %2299 = vmatprep.subr.bf16.mxu1 %v3484_v49  ;;  %v3565_v46 = vld [vmem:[#allocation10 + $0xc0] sm:$0xff]   ;;  %v3567_v49 = vld [vmem:[#allocation10 + $0x48] sm:$0xff]  }
 0x26d   :  { %v3564_v47 = vld [vmem:[#allocation10] sm:$0xff]  }
 0x26e   :  { %v3566_v48 = vld [vmem:[#allocation10 + $0x80] sm:$0xff]  }
 0x26f   :  { %v1397_v54 = vld [vmem:[#allocation2 + $0x18] sm:$0xff]  ;;  %2214 = vmatpush1.bf16.msra.mxu0 %v3479_v50  ;;  %2300 = vmatpush1.bf16.msra.mxu1 %v3482_v51  ;;  %v3569_v50 = vld [vmem:[#allocation10 + $0xc8] sm:$0xff]  }
 0x270   :  { %2241 = vmatprep.mubr.bf16.mxu0 %v1397_v54  ;;  %2327 = vmatprep.mubr.bf16.mxu1 %v1397_v54  ;;  %v3568_v51 = vld [vmem:[#allocation10 + $0x8] sm:$0xff]   ;;  %v3573_v54 = vld [vmem:[#allocation10 + $0xd0] sm:$0xff]  }
 0x271   :  { %2215 = vmatprep.subr.bf16.mxu0 %v3487_v52  ;;  %2301 = vmatprep.subr.bf16.mxu1 %v3490_v53  ;;  %v3570_v52 = vld [vmem:[#allocation10 + $0x88] sm:$0xff]   ;;  %v3571_v53 = vld [vmem:[#allocation10 + $0x50] sm:$0xff]  }
 0x273   :  { %2216 = vmatpush1.bf16.msra.mxu0 %v3485_v55  ;;  %2302 = vmatpush1.bf16.msra.mxu1 %v3488_v56  ;;  %v3572_v55 = vld [vmem:[#allocation10 + $0x10] sm:$0xff]  }
 0x274   :  { %2217 = vmatprep.subr.bf16.mxu0 %v3493_v57  ;;  %2303 = vmatprep.subr.bf16.mxu1 %v3496_v58  ;;  %v3574_v56 = vld [vmem:[#allocation10 + $0x90] sm:$0xff]   ;;  %v3575_v57 = vld [vmem:[#allocation10 + $0x58] sm:$0xff]  }
 0x275   :  { %v3576_v58 = vld [vmem:[#allocation10 + $0x18] sm:$0xff]  }
 0x277   :  { %2218 = vmatpush1.bf16.msra.mxu0 %v3491_v59  ;;  %2304 = vmatpush1.bf16.msra.mxu1 %v3494_v60  ;;  %v3580_v59 = vld [vmem:[#allocation10 + $0x20] sm:$0xff]   ;;  %v3577_v60 = vld [vmem:[#allocation10 + $0xd8] sm:$0xff]  }
 0x278   :  { %2219 = vmatprep.subr.bf16.mxu0 %v3499_v61  ;;  %2305 = vmatprep.subr.bf16.mxu1 %v3502_v62  ;;  %v3583_v61 = vld [vmem:[#allocation10 + $0x68] sm:$0xff]   ;;  %v3578_v62 = vld [vmem:[#allocation10 + $0x98] sm:$0xff]  }
 0x27b   :  { %2220 = vmatpush1.bf16.msra.mxu0 %v3497_v63  ;;  %2306 = vmatpush1.bf16.msra.mxu1 %v3500_v0  ;;  %v3584_v63 = vld [vmem:[#allocation10 + $0x28] sm:$0xff]   ;;  %v3587_v0 = vld [vmem:[#allocation10 + $0x70] sm:$0xff]  }
 0x27c   :  { %2221 = vmatprep.subr.bf16.mxu0 %v3505_v1  ;;  %2307 = vmatprep.subr.bf16.mxu1 %v3508_v2  ;;  %v3588_v1 = vld [vmem:[#allocation10 + $0x30] sm:$0xff]   ;;  %v3581_v2 = vld [vmem:[#allocation10 + $0xe0] sm:$0xff]  }
 0x27f   :  { %2222 = vmatpush1.bf16.msra.mxu0 %v3503_v3  ;;  %2308 = vmatpush1.bf16.msra.mxu1 %v3506_v4  ;;  %v3582_v3 = vld [vmem:[#allocation10 + $0xa0] sm:$0xff]   ;;  %v3591_v4 = vld [vmem:[#allocation10 + $0x78] sm:$0xff]  }
 0x280   :  { %2223 = vmatprep.subr.bf16.mxu0 %v3511_v5  ;;  %2309 = vmatprep.subr.bf16.mxu1 %v3514_v6  ;;  %v3592_v5 = vld [vmem:[#allocation10 + $0x38] sm:$0xff]   ;;  %v3585_v6 = vld [vmem:[#allocation10 + $0xe8] sm:$0xff]  }
 0x283   :  { %2224 = vmatpush1.bf16.msra.mxu0 %v3509_v7  ;;  %2310 = vmatpush1.bf16.msra.mxu1 %v3512_v8  ;;  %v3586_v7 = vld [vmem:[#allocation10 + $0xa8] sm:$0xff]   ;;  %v3589_v8 = vld [vmem:[#allocation10 + $0xf0] sm:$0xff]  }
 0x284   :  { %2225 = vmatprep.subr.bf16.mxu0 %v3517_v9  ;;  %2311 = vmatprep.subr.bf16.mxu1 %v3520_v10  ;;  %v3590_v9 = vld [vmem:[#allocation10 + $0xb0] sm:$0xff]   ;;  %v3593_v10 = vld [vmem:[#allocation10 + $0xf8] sm:$0xff]  }
 0x287   :  { %2226 = vmatpush1.bf16.msra.mxu0 %v3515_v11  ;;  %2312 = vmatpush1.bf16.msra.mxu1 %v3518_v12  ;;  %v3594_v11 = vld [vmem:[#allocation10 + $0xb8] sm:$0xff]  }
 0x288   :  { %2227 = vmatprep.subr.bf16.mxu0 %v3523_v13  ;;  %2313 = vmatprep.subr.bf16.mxu1 %v3526_v15 }
 0x28b   :  { %2228 = vmatpush1.bf16.msra.mxu0 %v3521_v16  ;;  %2314 = vmatpush1.bf16.msra.mxu1 %v3524_v17 }
 0x28c   :  { %2229 = vmatprep.subr.bf16.mxu0 %v3529_v18  ;;  %2315 = vmatprep.subr.bf16.mxu1 %v3532_v19 }
 0x28f   :  { %2230 = vmatpush1.bf16.msra.mxu0 %v3527_v22  ;;  %2316 = vmatpush1.bf16.msra.mxu1 %v3530_v23 }
 0x290   :  { %2231 = vmatprep.subr.bf16.mxu0 %v3535_v14  ;;  %2317 = vmatprep.subr.bf16.mxu1 %v3538_v24 }
 0x293   :  { %2232 = vmatpush1.bf16.msra.mxu0 %v3533_v25  ;;  %2318 = vmatpush1.bf16.msra.mxu1 %v3536_v26 }
 0x294   :  { %2233 = vmatprep.subr.bf16.mxu0 %v3541_v27  ;;  %2319 = vmatprep.subr.bf16.mxu1 %v3544_v28 }
 0x297   :  { %2234 = vmatpush1.bf16.msra.mxu0 %v3539_v29  ;;  %2320 = vmatpush1.bf16.msra.mxu1 %v3542_v30 }
 0x298   :  { %2235 = vmatprep.subr.bf16.mxu0 %v3547_v31  ;;  %2321 = vmatprep.subr.bf16.mxu1 %v3550_v32 }
 0x29b   :  { %2236 = vmatpush1.bf16.msra.mxu0 %v3545_v33  ;;  %2322 = vmatpush1.bf16.msra.mxu1 %v3548_v34 }
 0x29c   :  { %2237 = vmatprep.subr.bf16.mxu0 %v3553_v36  ;;  %2323 = vmatprep.subr.bf16.mxu1 %v3556_v37 }
 0x29f   :  { %2238 = vmatpush1.bf16.msra.mxu0 %v3551_v38  ;;  %2324 = vmatpush1.bf16.msra.mxu1 %v3554_v40 }
 0x2a0   :  { %2239 = vmatprep.subr.bf16.mxu0 %v3559_v41  ;;  %2325 = vmatprep.subr.bf16.mxu1 %v3562_v42 }
 0x2a3   :  { %2240 = vmatpush1.bf16.msra.mxu0 %v3557_v43  ;;  %2326 = vmatpush1.bf16.msra.mxu1 %v3560_v44 }
 0x2a4   :  { %3056 = vmatprep.subr.bf16.mxu0 %v3563_v45  ;;  %3078 = vmatprep.subr.bf16.mxu1 %v3565_v46 }
 0x2a6   :  { %2242 = vmatmul.mubr.bf16.vlgmr.msra.gmra.mrb[8].mxu0 %v3880_v35  ;;  %2328 = vmatmul.mubr.bf16.vlgmr.msra.gmra.mrb[8].mxu1 %v3880_v35  ;;  %v3579_v35 = vld [vmem:[#allocation10 + $0x60] sm:$0xff]  }
 0x2a7   :  { %3057 = vmatpush3.bf16.msra.mxu0 %v3564_v47  ;;  %3079 = vmatpush3.bf16.msra.mxu1 %v3566_v48 }
 0x2a8   :  { %3058 = vmatprep.subr.bf16.mxu0 %v3567_v49  ;;  %3080 = vmatprep.subr.bf16.mxu1 %v3569_v50 }
 0x2ab   :  { %3059 = vmatpush3.bf16.msra.mxu0 %v3568_v51  ;;  %3081 = vmatpush3.bf16.msra.mxu1 %v3570_v52 }
 0x2ac   :  { %3060 = vmatprep.subr.bf16.mxu0 %v3571_v53  ;;  %3082 = vmatprep.subr.bf16.mxu1 %v3573_v54 }
 0x2af   :  { %3061 = vmatpush3.bf16.msra.mxu0 %v3572_v55  ;;  %3083 = vmatpush3.bf16.msra.mxu1 %v3574_v56 }
 0x2b0   :  { %3062 = vmatprep.subr.bf16.mxu0 %v3575_v57  ;;  %3084 = vmatprep.subr.bf16.mxu1 %v3577_v60 }
 0x2b3   :  { %3063 = vmatpush3.bf16.msra.mxu0 %v3576_v58  ;;  %3085 = vmatpush3.bf16.msra.mxu1 %v3578_v62 }
 0x2b4   :  { %3064 = vmatprep.subr.bf16.mxu0 %v3579_v35  ;;  %3086 = vmatprep.subr.bf16.mxu1 %v3581_v2 }
 0x2b7   :  { %3065 = vmatpush3.bf16.msra.mxu0 %v3580_v59  ;;  %3087 = vmatpush3.bf16.msra.mxu1 %v3582_v3 }
 0x2b8   :  { %3066 = vmatprep.subr.bf16.mxu0 %v3583_v61  ;;  %3088 = vmatprep.subr.bf16.mxu1 %v3585_v6 }
 0x2bb   :  { %3067 = vmatpush3.bf16.msra.mxu0 %v3584_v63  ;;  %3089 = vmatpush3.bf16.msra.mxu1 %v3586_v7 }
 0x2bc   :  { %3068 = vmatprep.subr.bf16.mxu0 %v3587_v0  ;;  %3090 = vmatprep.subr.bf16.mxu1 %v3589_v8 }
 0x2bf   :  { %3069 = vmatpush3.bf16.msra.mxu0 %v3588_v1  ;;  %3091 = vmatpush3.bf16.msra.mxu1 %v3590_v9 }
 0x2c0   :  { %3070 = vmatprep.subr.bf16.mxu0 %v3591_v4  ;;  %3092 = vmatprep.subr.bf16.mxu1 %v3593_v10 }
 0x2c3   :  { %3071 = vmatpush3.bf16.msra.mxu0 %v3592_v5  ;;  %3093 = vmatpush3.bf16.msra.mxu1 %v3594_v11 }
 0x379   :  { %v2243_v12 = vpop.f32.mrb[8].mxu0  ;;  %v2329_v13 = vpop.f32.mrb[8].mxu1 }
 0x37a   :  { %vm2338_vm2 = vcmp.ge.f32.partialorder %v2243_v12, 0.0  ;;  %v2346_v15 = vmul.f32 %v2243_v12, %v3850_v39  ;;  %v2245_v16 = vpop.f32.mrb[9].mxu0  ;;  %v2331_v17 = vpop.f32.mrb[9].mxu1  ;;  %vm2340_vm3 = vcmp.ge.f32.partialorder %v2329_v13, 0.0  ;;  %v2348_v18 = vmul.f32 %v2329_v13, %v3850_v39 }
 0x37b   :  { %vm2339_vm4 = vcmp.ge.f32.partialorder %v2245_v16, 0.0  ;;  %v2247_v19 = vpop.f32.mrb[10].mxu0  ;;  %v2333_v22 = vpop.f32.mrb[10].mxu1  ;;  %v2347_v23 = vmul.f32 %v2245_v16, %v3850_v39  ;;  %vm2341_vm5 = vcmp.ge.f32.partialorder %v2331_v17, 0.0  ;;  %v2349_v27 = vmul.f32 %v2331_v17, %v3850_v39 }
 0x37c   :  { %vm2342_vm6 = vcmp.ge.f32.partialorder %v2247_v19, 0.0  ;;  %v2350_v14 = vmul.f32 %v2247_v19, %v3850_v39  ;;  %v2249_v24 = vpop.f32.mrb[11].mxu0  ;;  %v2335_v25 = vpop.f32.mrb[11].mxu1  ;;  %v2354_v26 = vsel %vm2338_vm2, %v2243_v12, %v2346_v15  ;;  %vm2344_vm7 = vcmp.ge.f32.partialorder %v2333_v22, 0.0 }
 0x37d   :  { %v2352_v28 = vmul.f32 %v2333_v22, %v3850_v39  ;;  %vm2343_vm10 = vcmp.ge.f32.partialorder %v2249_v24, 0.0  ;;  %v2351_v30 = vmul.f32 %v2249_v24, %v3850_v39  ;;  %vm2345_vm11 = vcmp.ge.f32.partialorder %v2335_v25, 0.0 }
 0x37e   :  { %v2358_v29 = vsel %vm2342_vm6, %v2247_v19, %v2350_v14  ;;  %v2356_v31 = vsel %vm2340_vm3, %v2329_v13, %v2348_v18  ;;  %v2353_v34 = vmul.f32 %v2335_v25, %v3850_v39  ;;  %v2355_v36 = vsel %vm2339_vm4, %v2245_v16, %v2347_v23 }
 0x37f   :  { %v2362_v32 = vpack.c.bf16 %v2358_v29, %v2354_v26  ;;  %v2360_v33 = vsel %vm2344_vm7, %v2333_v22, %v2352_v28  ;;  %v2359_v38 = vsel %vm2343_vm10, %v2249_v24, %v2351_v30  ;;  %v2357_v40 = vsel %vm2341_vm5, %v2331_v17, %v2349_v27 }
 0x380   :  { %v2364_v37 = vpack.c.bf16 %v2360_v33, %v2356_v31  ;;  %v2363_v41 = vpack.c.bf16 %v2359_v38, %v2355_v36  ;;  %v2361_v42 = vsel %vm2345_vm11, %v2335_v25, %v2353_v34 }
 0x381   :  { %v2365_v43 = vpack.c.bf16 %v2361_v42, %v2357_v40 }
 0x382   :  { %2664 = vmatprep.mubr.bf16.mxu0 %v2363_v41 }
 0x383   :  { %2369 = vst [vmem:[#allocation2 + $0x18] sm:$0xff] %v2365_v43  ;;  %2665 = vmatmul.mubr.bf16.vlgmr.msra.gmra.mrb[12].mxu0 %v2362_v32 }
 0x384   :  { %2370 = vst.msk [vmem:[#allocation2 + $0x18] sm:$0xff] %vm408_vm8, %v3723_v21 }
 0x385   :  { %2371 = vst.msk [vmem:[#allocation2 + $0x18] sm:$0xff] %vm414_vm9, %v3862_v20 }
 0x38c   :  { %v2375_v44 = vld [vmem:[#allocation2 + $0x18] sm:$0xff] }
 0x38d   :  { %2705 = vmatprep.mubr.bf16.mxu1 %v2375_v44 }
 0x38e   :  { %2706 = vmatmul.mubr.bf16.vlgmr.msra.gmra.mrb[12].mxu1 %v2364_v37 }
 0x456   :  { %v3072_v39 = vpop.f32.mrb[12].mxu0 }
 0x457   :  { %v3073_v45 = vpop.f32.mrb[13].mxu0 }
 0x458   :  { %v3074_v46 = vadd.f32 %v3073_v45, %v3072_v39  ;;  %v3075_v47 = vpop.f32.mrb[14].mxu0 }
 0x459   :  { %v3076_v48 = vpop.f32.mrb[15].mxu0 }
 0x45a   :  { %v3077_v49 = vadd.f32 %v3076_v48, %v3075_v47 }
 0x461   :  { %v3094_v50 = vpop.f32.mrb[12].mxu1 }
 0x462   :  { %v3095_v51 = vpop.f32.mrb[13].mxu1 }
 0x463   :  { %v3096_v52 = vadd.f32 %v3095_v51, %v3094_v50  ;;  %v3097_v53 = vpop.f32.mrb[14].mxu1 }
 0x464   :  { %v3098_v54 = vpop.f32.mrb[15].mxu1 }
 0x465   :  { %v2708_v21 = vadd.f32 %v3096_v52, %v3074_v46  ;;  %v3099_v55 = vadd.f32 %v3098_v54, %v3097_v53 }
 0x467   :  { %2714 = vst [vmem:[#allocation12] sm:$0xff] %v2708_v21  ;;  %v2711_v20 = vadd.f32 %v3099_v55, %v3077_v49 }
 0x469   :  { %2715 = vst [vmem:[#allocation12 + $0x8] sm:$0xff] %v2711_v20 }
 0x46a   :  { %3694 = shalt.err (!%p3691_p8)
}
 0x46b   :  { %s3695_s16 = scalar_lea.hbm %s3923_s7, 256 }
 0x46c   :  { %p3696_p9 = scmp.ne.s32.totalorder %s3923_s7, %s3695_s16  ;;  %p3699_p10 = scmp.lt.u32.totalorder %s3695_s16, %s3923_s7 }
 0x46e   :  { %p3701_p11 = pnand %p3699_p10, %p3696_p9 }
 0x470   :  { %3704 = shalt.err (!%p3701_p11)
}
 0x471   :  { %s3725_s19 = smov 128   ;;  %s3726_s20 = smov 8  }
 0x472   :  { %2727 = dma.vmem_to_hbm [thread:$0]  %s2722_s10, 256, %s3923_s7, [#allocation6], %s3725_s19, %s3725_s19, %s3726_s20  }
 0x473   :  { %3711 = dma.done.wait [#allocation6], 256  }
 0x474   :  { %3712 = vsyncadd [#allocation6], 4294967040 }
 0x475   :  { %2731 = vsyncpa [#allocation5], 1 }
 0x476   :  { %2732 = vsyncpa [#allocation8], 1 }
 0x477   :  { %2733 = vsyncpa [#allocation11], 1 }
 0x478   :  { %2734 = vsyncpa [#allocation6], 1 }

</bundles_post_ra>
